<compile_context>
chip_gen: v7x
topology: tpu7x:2x2x1
jax: 0.10.0
libtpu: 0.0.40
codegen_flags: <defaults>
</compile_context>

<pallas_src>
import jax
import jax.numpy as jnp
from jax.experimental import pallas as pl
from jax.experimental.pallas import tpu as pltpu


def _round_up(n, m):
    return ((n + m - 1) // m) * m


def _choose_packing(d, target_lanes=256):
    """Tokens packed per lane-row: make L = P*D hit 256 (v6e/v7x MXU width) or 128."""
    for target in (target_lanes, 128):
        if d <= target and target % d == 0:
            return target // d
    return 1


def pack_bsq_weights(w_down, b_down, w_up, b_up, *, dtype=jnp.float32, target_lanes=256):
    """Build block-diagonal packed weights ONCE (hoisted out of the per-call path).

    w_down: (C, D), b_down: (C,)   -- torch Linear(embedding_dim -> codebook_bits)
    w_up:   (D, C), b_up:   (D,)   -- torch Linear(codebook_bits -> embedding_dim)
    """
    C, D = w_down.shape
    P = _choose_packing(D, target_lanes)
    L = P * D
    eye_p = jnp.eye(P, dtype=dtype)
    # kron(I_P, W) applies the same projection independently to each of the P
    # tokens packed into one 128/256-lane row.
    wd_blk = jnp.kron(eye_p, w_down.T.astype(dtype))           # (L, P*C)
    wu_blk = jnp.kron(eye_p, w_up.T.astype(dtype))             # (P*C, L)
    bd_blk = jnp.tile(b_down.astype(dtype), P).reshape(1, P * C)
    bu_blk = jnp.tile(b_up.astype(dtype), P).reshape(1, L)
    return {"wd": wd_blk, "bd": bd_blk, "wu": wu_blk, "bu": bu_blk,
            "P": P, "D": D, "C": C}


def _make_bsq_kernel(down_bf16):
    def _bsq_kernel(x_ref, wd_ref, bd_ref, wu_ref, bu_ref, o_ref):
        # x_ref : (R, L)      R packed rows, L = P*D lanes (P tokens per row)
        # wd_ref: (L, P*C)    block-diagonal down-projection weight  kron(I_P, Wd^T)
        # bd_ref: (1, P*C)    tiled down-projection bias
        # wu_ref: (P*C, L)    block-diagonal up-projection weight    kron(I_P, Wu^T)
        # bu_ref: (1, L)      tiled up-projection bias
        x = x_ref[...]
        wd = wd_ref[...]
        if down_bf16:
            # Only sign(h) is consumed, so bf16 rounding here is inconsequential.
            h = jnp.dot(x.astype(jnp.bfloat16), wd.astype(jnp.bfloat16),
                        preferred_element_type=jnp.float32)
        else:
            h = jnp.dot(x, wd, preferred_element_type=jnp.float32,
                        precision=jax.lax.Precision.HIGHEST)
        h = h + bd_ref[...]
        # sign(l2_normalize(h)) == sign(h): normalization is skipped in the forward.
        code = jnp.where(h >= 0.0, 1.0, -1.0).astype(jnp.float32)
        out = jnp.dot(code, wu_ref[...], preferred_element_type=jnp.float32,
                      precision=jax.lax.Precision.HIGHEST)
        o_ref[...] = (out + bu_ref[...]).astype(o_ref.dtype)
    return _bsq_kernel


def bsq_forward(x, packed, *, tm=16384, down_bf16=False):
    """BSQ forward.

    x: (B, H, W, D) channels-last (matches the torch module usage).
    packed: output of pack_bsq_weights (computed once at module init).
    tm: tokens per grid step (default 16384; rounded to granularity, capped so the
        grid keeps >= 2 steps when possible for v7x megacore sharding).
    down_bf16: run the down-projection matmul in bf16 (v5e compute-headroom knob).
    """
    B, H, W, D = x.shape
    assert D == packed["D"], "x feature dim does not match packed weights"
    P, C = packed["P"], packed["C"]
    L, PC = P * D, P * C
    wd, bd, wu, bu = packed["wd"], packed["bd"], packed["wu"], packed["bu"]

    dtype = x.dtype
    itemsize = jnp.dtype(dtype).itemsize
    M = B * H * W

    x2d = x.reshape(M, D)
    if M % P != 0:
        # Only copies x when the token count isn't a multiple of the packing factor;
        # otherwise the input is streamed straight from its original HBM buffer.
        x2d = jnp.pad(x2d, ((0, P - M % P), (0, 0)))
    n_rows = x2d.shape[0] // P
    xp = x2d.reshape(n_rows, L)                    # lane-dense packed view (free reshape)

    # Sublane granule for the packed-row tile (f32 -> 8, bf16 -> 16, int8/fp8 -> 32).
    gran_rows = {4: 8, 2: 16, 1: 32}.get(itemsize, 8)

    # Rows per grid step: as large as requested, but
    #  (a) a multiple of the sublane granule,
    #  (b) no larger than the (rounded-up) problem,
    #  (c) small enough to keep >= 2 grid steps when the problem allows it,
    #      so v7x's two TensorCores can shard the "parallel" axis.
    req_rows = max(1, tm // P)
    if n_rows > gran_rows:
        req_rows = min(req_rows, _round_up(-(-n_rows // 2), gran_rows))
    rows_per_tile = min(_round_up(req_rows, gran_rows), _round_up(n_rows, gran_rows))
    grid = (pl.cdiv(n_rows, rows_per_tile),)

    # VMEM footprint: double-buffered x/out tiles + (tiny) resident weights.
    w_bytes = sum(int(a.size) * jnp.dtype(a.dtype).itemsize for a in (wd, bd, wu, bu))
    tile_bytes = rows_per_tile * L * itemsize
    vmem_needed = 2 * (2 * tile_bytes) + 2 * w_bytes
    cp_kwargs = {"dimension_semantics": ("parallel",)}
    if vmem_needed > (14 << 20):
        # Above v5e's ~16 MiB default scoped-VMEM budget: raise the limit explicitly
        # so a large tm doesn't silently regress the pipelining on v5e.
        cp_kwargs["vmem_limit_bytes"] = int(vmem_needed + (4 << 20))

    cost = pl.CostEstimate(
        flops=2 * 2 * n_rows * L * PC,                      # down + up matmuls
        transcendentals=0,
        bytes_accessed=2 * n_rows * L * itemsize + w_bytes,  # x in + out + tiny weights
    )

    outp = pl.pallas_call(
        _make_bsq_kernel(down_bf16),
        out_shape=jax.ShapeDtypeStruct((n_rows, L), dtype),
        grid_spec=pltpu.PrefetchScalarGridSpec(
            num_scalar_prefetch=0,
            grid=grid,
            in_specs=[
                pl.BlockSpec((rows_per_tile, L), lambda i: (i, 0)),
                pl.BlockSpec((L, PC), lambda i: (0, 0)),
                pl.BlockSpec((1, PC), lambda i: (0, 0)),
                pl.BlockSpec((PC, L), lambda i: (0, 0)),
                pl.BlockSpec((1, L), lambda i: (0, 0)),
            ],
            out_specs=pl.BlockSpec((rows_per_tile, L), lambda i: (i, 0)),
        ),
        compiler_params=pltpu.CompilerParams(**cp_kwargs),
        cost_estimate=cost,
    )(xp, wd, bd, wu, bu)

    out2d = outp.reshape(n_rows * P, D)[:M]
    return out2d.reshape(B, H, W, D)


def bsq_forward_ref(x, w_down, b_down, w_up, b_up):
    """Pure-JAX reference (keeps the full torch semantics, incl. L2 normalize)."""
    hi = jax.lax.Precision.HIGHEST
    h = jnp.einsum("bhwd,cd->bhwc", x, w_down, precision=hi) + b_down
    norm = jnp.sqrt(jnp.sum(h * h, axis=-1, keepdims=True))
    h = h / jnp.maximum(norm, 1e-12)
    code = 2.0 * (h >= 0.0).astype(jnp.float32) - 1.0
    return jnp.einsum("bhwc,dc->bhwd", code, w_up, precision=hi) + b_up


if __name__ == "__main__":
    codebook_bits = 16
    embedding_dim = 32
    B, H, W = 2, 8, 8

    key = jax.random.PRNGKey(0)
    kx, k1, k2, k3, k4 = jax.random.split(key, 5)

    # Deterministic init mirroring torch.nn.Linear's U(-1/sqrt(fan_in), 1/sqrt(fan_in))
    bound_d = 1.0 / (embedding_dim ** 0.5)
    bound_u = 1.0 / (codebook_bits ** 0.5)
    w_down = jax.random.uniform(k1, (codebook_bits, embedding_dim), jnp.float32, -bound_d, bound_d)
    b_down = jax.random.uniform(k2, (codebook_bits,), jnp.float32, -bound_d, bound_d)
    w_up = jax.random.uniform(k3, (embedding_dim, codebook_bits), jnp.float32, -bound_u, bound_u)
    b_up = jax.random.uniform(k4, (embedding_dim,), jnp.float32, -bound_u, bound_u)

    x = jax.random.normal(kx, (B, H, W, embedding_dim), jnp.float32)

    # Weight packing is done once ("module init"), not per forward call.
    packed = pack_bsq_weights(w_down, b_down, w_up, b_up)
    packed = jax.tree_util.tree_map(
        lambda a: jax.block_until_ready(a) if isinstance(a, jax.Array) else a, packed)

    out = bsq_forward(x, packed)
    out = jax.block_until_ready(out)

    ref = bsq_forward_ref(x, w_down, b_down, w_up, b_up)
    assert out.shape == (B, H, W, embedding_dim)
    assert jnp.allclose(out, ref, atol=1e-5, rtol=1e-5), "Pallas output mismatch vs reference"

    print("KERNEL_OK")
</pallas_src>

<mosaic_0001>
module attributes {stable_mosaic.version = 11 : i64} {
  func.func @_bsq_kernel(%arg0: i32, %arg1: memref<8x256xf32, #tpu.memory_space<vmem>>, %arg2: memref<256x128xf32, #tpu.memory_space<vmem>>, %arg3: memref<1x128xf32, #tpu.memory_space<vmem>>, %arg4: memref<128x256xf32, #tpu.memory_space<vmem>>, %arg5: memref<1x256xf32, #tpu.memory_space<vmem>>, %arg6: memref<8x256xf32, #tpu.memory_space<vmem>>) attributes {dimension_semantics = [#tpu.dimension_semantics<parallel>], iteration_bounds = array<i64: 2>, scalar_prefetch = 0 : i64, scratch_operands = 0 : i64, tpu.core_type = #tpu.core_type<tc>, window_params = [{transform_indices = @transform_0, window_bounds = array<i64: 8, 256>}, {pipeline_mode = #tpu.pipeline_mode<synchronous>, transform_indices = @transform_1, window_bounds = array<i64: 256, 128>}, {pipeline_mode = #tpu.pipeline_mode<synchronous>, transform_indices = @transform_2, window_bounds = array<i64: 1, 128>}, {pipeline_mode = #tpu.pipeline_mode<synchronous>, transform_indices = @transform_3, window_bounds = array<i64: 128, 256>}, {pipeline_mode = #tpu.pipeline_mode<synchronous>, transform_indices = @transform_4, window_bounds = array<i64: 1, 256>}, {transform_indices = @transform_5, window_bounds = array<i64: 8, 256>}]} {
    %c0 = arith.constant 0 : index
    %c0_0 = arith.constant 0 : index
    %0 = vector.load %arg1[%c0, %c0_0] : memref<8x256xf32, #tpu.memory_space<vmem>>, vector<8x256xf32>
    %c0_1 = arith.constant 0 : index
    %c0_2 = arith.constant 0 : index
    %1 = vector.load %arg2[%c0_1, %c0_2] : memref<256x128xf32, #tpu.memory_space<vmem>>, vector<256x128xf32>
    %cst = arith.constant dense<0.000000e+00> : vector<8x128xf32>
    %2 = tpu.matmul %0, %1, %cst {dimension_numbers = #tpu.dot_dimension_numbers<[1], [0], [0], [1], [0, 0, 1, 1], [], []>, precision = #tpu.contract_precision<fp32>} : vector<8x256xf32>, vector<256x128xf32>, vector<8x128xf32> -> vector<8x128xf32>
    %c0_3 = arith.constant 0 : index
    %c0_4 = arith.constant 0 : index
    %3 = vector.load %arg3[%c0_3, %c0_4] : memref<1x128xf32, #tpu.memory_space<vmem>>, vector<1x128xf32>
    %4 = vector.broadcast %3 : vector<1x128xf32> to vector<8x128xf32>
    %5 = arith.addf %2, %4 : vector<8x128xf32>
    %cst_5 = arith.constant 0.000000e+00 : f32
    %6 = vector.broadcast %cst_5 : f32 to vector<8x128xf32>
    %7 = arith.cmpf oge, %5, %6 : vector<8x128xf32>
    %cst_6 = arith.constant 1.000000e+00 : f32
    %cst_7 = arith.constant -1.000000e+00 : f32
    %8 = vector.broadcast %cst_6 : f32 to vector<8x128xf32>
    %9 = vector.broadcast %cst_7 : f32 to vector<8x128xf32>
    %10 = arith.select %7, %8, %9 : vector<8x128xi1>, vector<8x128xf32>
    %c0_8 = arith.constant 0 : index
    %c0_9 = arith.constant 0 : index
    %11 = vector.load %arg4[%c0_8, %c0_9] : memref<128x256xf32, #tpu.memory_space<vmem>>, vector<128x256xf32>
    %cst_10 = arith.constant dense<0.000000e+00> : vector<8x256xf32>
    %12 = tpu.matmul %10, %11, %cst_10 {dimension_numbers = #tpu.dot_dimension_numbers<[1], [0], [0], [1], [0, 0, 1, 1], [], []>, precision = #tpu.contract_precision<fp32>} : vector<8x128xf32>, vector<128x256xf32>, vector<8x256xf32> -> vector<8x256xf32>
    %c0_11 = arith.constant 0 : index
    %c0_12 = arith.constant 0 : index
    %13 = vector.load %arg5[%c0_11, %c0_12] : memref<1x256xf32, #tpu.memory_space<vmem>>, vector<1x256xf32>
    %14 = vector.broadcast %13 : vector<1x256xf32> to vector<8x256xf32>
    %15 = arith.addf %12, %14 : vector<8x256xf32>
    %c0_13 = arith.constant 0 : index
    %c0_14 = arith.constant 0 : index
    %16 = vector.load %arg6[%c0_13, %c0_14] : memref<8x256xf32, #tpu.memory_space<vmem>>, vector<8x256xf32>
    tpu.vector_store %arg6[%c0_13, %c0_14], %15 {strides = array<i32>} : memref<8x256xf32, #tpu.memory_space<vmem>>, vector<8x256xf32>,
    return
  }
  func.func @transform_0(%arg0: i32) -> (i32, i32) {
    %c0_i32 = arith.constant 0 : i32
    %c0_i32_0 = arith.constant 0 : i32
    return %arg0, %c0_i32 : i32, i32
  }
  func.func @transform_1(%arg0: i32) -> (i32, i32) {
    %c0_i32 = arith.constant 0 : i32
    %c0_i32_0 = arith.constant 0 : i32
    %c0_i32_1 = arith.constant 0 : i32
    return %c0_i32, %c0_i32_0 : i32, i32
  }
  func.func @transform_2(%arg0: i32) -> (i32, i32) {
    %c0_i32 = arith.constant 0 : i32
    %c0_i32_0 = arith.constant 0 : i32
    %c0_i32_1 = arith.constant 0 : i32
    return %c0_i32, %c0_i32_0 : i32, i32
  }
  func.func @transform_3(%arg0: i32) -> (i32, i32) {
    %c0_i32 = arith.constant 0 : i32
    %c0_i32_0 = arith.constant 0 : i32
    %c0_i32_1 = arith.constant 0 : i32
    return %c0_i32, %c0_i32_0 : i32, i32
  }
  func.func @transform_4(%arg0: i32) -> (i32, i32) {
    %c0_i32 = arith.constant 0 : i32
    %c0_i32_0 = arith.constant 0 : i32
    %c0_i32_1 = arith.constant 0 : i32
    return %c0_i32, %c0_i32_0 : i32, i32
  }
  func.func @transform_5(%arg0: i32) -> (i32, i32) {
    %c0_i32 = arith.constant 0 : i32
    %c0_i32_0 = arith.constant 0 : i32
    return %arg0, %c0_i32 : i32, i32
  }
}

</mosaic_0001>

<bundles_post_ra>
// kernel: tpu_custom_call.1
= control target key start
LH: loop header
LB: loop body
LE: loop exit
PB: predicated region body
PF: predicated region fallthrough
CT: control target
= control target key end

     0   :  { %10 = vsyncpa [#allocation3], 0  ;;  %s4185_s0 = inlined_call_operand.hbm [shape: f32[16,256], index: 0, kind: input, shape index: {}]   ;;  %s4186_s1 = inlined_call_operand.hbm [shape: f32[256,128], index: 1, kind: input, shape index: {}]   ;;  %s4187_s2 = inlined_call_operand.vmem [shape: f32[1,128], index: 2, kind: input, shape index: {}]   ;;  %s4188_s3 = inlined_call_operand.hbm [shape: f32[128,256], index: 3, kind: input, shape index: {}]   ;;  %s4189_s4 = inlined_call_operand.vmem [shape: f32[1,256], index: 4, kind: input, shape index: {}]   ;;  %s4190_s5 = inlined_call_operand.hbm [shape: f32[16,256], index: 5, kind: output, shape index: {}]  }
   0x1   :  { %12 = vsyncpa [#allocation3 + $0x1], 0 }
   0x2   :  { %13 = vsyncpa [#allocation6], 0 }
   0x3   :  { %14 = vsyncpa [#allocation4], 0 }
   0x4   :  { %16 = vsyncpa [#allocation4 + $0x1], 0  ;;  %s3072_s18 = smov 0   ;;  %s3074_s19 = smov 0  }
   0x5   :  { %s3076_s20 = smov 0   ;;  %s3078_s21 = smov 0  }
   0x6 LB: > { %s3093_s22 = sadd.s32 4294967295, %s3030_s21   ;;  %s2174_s23 = sadd.s32 4294967294, %s3030_s21   ;;  %s3030_s21 = sphi %s3078_s21, %s4528_s21   ;;  %s3026_s20 = sphi %s3076_s20, %s4527_s20   ;;  %s3022_s19 = sphi %s3074_s19, %s4526_s19   ;;  %s3018_s18 = sphi %s3072_s18, %s4525_s18  }
   0x7   : > { %p42_p0 = scmp.ne.s32.totalorder %s3022_s19, %s3018_s18  ;;  %p4191_p1 = scmp.eq.s32.totalorder %s3093_s22, 0 }
   0x8   : > { %p156_p3 = scmp.eq.s32.totalorder %s2174_s23, 1  ;;  %p2175_p5 = scmp.ge.s32.totalorder %s3030_s21, 1 }
   0x9   : > { %p3102_p4 = por %p4191_p1, %p42_p0  ;;  %p163_p7 = scmp.lt.s32.totalorder %s3030_s21, 3 }
   0xa   : > { %p3107_p6 = por %p156_p3, %p42_p0  ;;  %s3032_s27 = smov [#allocation5]  }
   0xb   : > { %s4335_s24 = scalar_select %p3102_p4, 1, 0 }
   0xc   : > { %s4336_s25 = scalar_select %p3107_p6, 1, 0 }
   0xd   : > { %p3112_p8 = pnand %p2175_p5, %p163_p7  ;;  %s175_s28 = sshll.u32 %s3032_s27, 4  ;;  %s3116_s28 = int_to_ptr.vmem [resolvable:$true] %s175_s28 }
   0xe   : > { %s3033_s30 = smov [#allocation7]   ;;  %s2874_s9 = scalar_lea.hbm %s4186_s1, 4096 }
   0xf   : > { %p2813_p9 = pneg %p3112_p8  ;;  %s191_s6 = sshll.u32 %s3033_s30, 4  ;;  %s3127_s6 = int_to_ptr.vmem [resolvable:$true] %s191_s6 }
  0x10   : > { %p2875_p12 = scmp.ne.s32.totalorder %s4186_s1, %s2874_s9  ;;  %p2881_p5 = scmp.lt.u32.totalorder %s2874_s9, %s4186_s1 }
  0x11   : > { %p3123_p11 = pnand %p2813_p9, %p4191_p1 }
  0x13   : > { %p2876_p13 = pneg %p3123_p11 }
  0x15   : > { %p2877_p0 = pnand %p2876_p13, %p2875_p12 }
  0x17   : > { %p2878_p3 = pneg %p2877_p0 }
  0x19   : > { %p2883_p7 = pnand %p2881_p5, %p2878_p3 }
  0x1b   : > { %2886 = shalt.err (!%p2883_p7)
}
  0x1c   : > { %s2887_s14 = scalar_lea.vmem %s3116_s28, 4096  ;;  %p2895_p2 = scmp.lt.s32.totalorder %s3116_s28, %s3116_s28 }
  0x1d   : > { %p2888_p9 = scmp.ne.s32.totalorder %s3116_s28, %s2887_s14  ;;  %p2896_p12 = scmp.lt.s32.totalorder %s2887_s14, %s2887_s14 }
  0x1f   : > { %p2890_p10 = pnand %p2888_p9, %p2876_p13  ;;  %p2897_p0 = por %p2896_p12, %p2895_p2 }
  0x21   : > { %p2891_p1 = pneg %p2890_p10 }
  0x23   : > { %p2898_p6 = pnand %p2897_p0, %p2891_p1 }
  0x25   : > { %2901 = shalt.err (!%p2898_p6)
}
  0x26   : > { %s3034_s15 = smov 128   ;;  %s3035_s16 = smov 8  }
  0x27   : > { %2816 = dma.hbm_to_vmem [thread:$0]  (!%p3123_p11), %s4186_s1, 4096, %s3116_s28, [#allocation6], %s3034_s15, %s3034_s15, %s3035_s16  }
  0x28   : > { %s2902_s7 = scalar_lea.hbm %s4188_s3, 4096 }
  0x29   : > { %p2903_p2 = scmp.ne.s32.totalorder %s4188_s3, %s2902_s7  ;;  %p2909_p10 = scmp.lt.u32.totalorder %s2902_s7, %s4188_s3 }
  0x2b   : > { %p2905_p1 = pnand %p2903_p2, %p2876_p13 }
  0x2d   : > { %p2906_p6 = pneg %p2905_p1 }
  0x2f   : > { %p2911_p3 = pnand %p2909_p10, %p2906_p6 }
  0x31   : > { %2914 = shalt.err (!%p2911_p3)
}
  0x32   : > { %s2915_s28 = scalar_lea.vmem %s3127_s6, 4096  ;;  %p2923_p12 = scmp.lt.s32.totalorder %s3127_s6, %s3127_s6 }
  0x33   : > { %p2916_p5 = scmp.ne.s32.totalorder %s3127_s6, %s2915_s28  ;;  %p2924_p0 = scmp.lt.s32.totalorder %s2915_s28, %s2915_s28 }
  0x35   : > { %p2918_p7 = pnand %p2916_p5, %p2876_p13  ;;  %p2925_p2 = por %p2924_p0, %p2923_p12 }
  0x37   : > { %p2919_p9 = pneg %p2918_p7 }
  0x39   : > { %p2926_p1 = pnand %p2925_p2, %p2919_p9 }
  0x3b   : > { %2929 = shalt.err (!%p2926_p1)
}
  0x3c   : > { %s3036_s12 = smov 256   ;;  %s3037_s13 = smov 16  }
  0x3d   : > { %2819 = dma.hbm_to_vmem [thread:$0]  (!%p3123_p11), %s4188_s3, 4096, %s3127_s6, [#allocation6], %s3036_s12, %s3036_s12, %s3037_s13  }
  0x3e   : > { %s3182_s16 = sadd.s32 1, %s3030_s21   ;;  %s29_s23 = sadd.s32 1, %s3026_s20 }
  0x3f   : > { %s26_s17 = ssub.s32 %s3030_s21, %s3182_s16  ;;  %p36_p6 = scmp.ne.s32.totalorder %s3026_s20, %s3022_s19 }
  0x40   : > { %p27_p13 = scmp.eq.s32.totalorder %s26_s17, 0  ;;  %p37_p10 = scmp.eq.s32.totalorder %s3030_s21, 0 }
  0x41   : > { %p4339_p5 = scmp.eq.s32.totalorder %s3093_s22, 1  ;;  %p2830_p9 = scmp.lt.s32.totalorder %s3030_s21, 2 }
  0x42   : > { %s3191_s27 = scalar_select %p27_p13, %s3026_s20, %s29_s23  }
  0x43   : > { %p38_p3 = por %p37_p10, %p36_p6  ;;  %p3195_p7 = por %p4339_p5, %p36_p6 }
  0x44   : > { %s208_s29 = sand.u32 1, %s3026_s20   ;;  %s2193_s6 = sshll.u32 %s3030_s21, 8 }
  0x45   : > { %s4340_s30 = scalar_select %p3195_p7, 1, 0 }
  0x46   : > { %s2179_s7 = sshll.u32 %s208_s29, 4  ;;  %s3205_s10 = scalar_lea.hbm %s4185_s0, %s2193_s6 }
  0x47   : > { %s212_s11 = scalar_lea.vmem [#allocation2], %s2179_s7  ;;  %p3209_p11 = pnand %p2830_p9, %p38_p3 }
  0x48   : > { %s220_s28 = sshll.u32 %s212_s11, 4  ;;  %s209_s13 = scalar_lea.sflag [#allocation3], %s208_s29  ;;  %s3207_s28 = int_to_ptr.vmem [resolvable:$true] %s220_s28 }
  0x49   : > { %s2930_s14 = scalar_lea.hbm %s3205_s10, 256  ;;  %p2932_p0 = pneg %p3209_p11 }
  0x4a   : > { %p2931_p12 = scmp.ne.s32.totalorder %s3205_s10, %s2930_s14  ;;  %s2935_s23 = scalar_lea.hbm %s4185_s0, 512 }
  0x4b   : > { %p2936_p13 = scmp.lt.u32.totalorder %s3205_s10, %s4185_s0  ;;  %p2937_p6 = scmp.lt.u32.totalorder %s2935_s23, %s2930_s14 }
  0x4c   : > { %p2933_p2 = pnand %p2932_p0, %p2931_p12  ;;  %p2939_p3 = scmp.lt.u32.totalorder %s2930_s14, %s3205_s10 }
  0x4d   : > { %p2938_p10 = por %p2937_p6, %p2936_p13 }
  0x4e   : > { %p2934_p1 = pneg %p2933_p2 }
  0x4f   : > { %p2940_p5 = por %p2939_p3, %p2938_p10 }
  0x51   : > { %p2941_p9 = pnand %p2940_p5, %p2934_p1 }
  0x53   : > { %2944 = shalt.err (!%p2941_p9)
}
  0x54   : > { %s2945_s29 = scalar_lea.vmem %s3207_s28, 256  ;;  %s3038_s8 = smov [#allocation2]  }
  0x55   : > { %p2946_p12 = scmp.ne.s32.totalorder %s3207_s28, %s2945_s29  ;;  %s2950_s9 = sshll.u32 %s3038_s8, 4  ;;  %s2951_s9 = int_to_ptr.vmem [resolvable:$false] %s2950_s9 }
  0x56   : > { %s2952_s11 = scalar_lea.vmem %s2951_s9, 512  ;;  %p2953_p4 = scmp.lt.s32.totalorder %s3207_s28, %s2951_s9 }
  0x57   : > { %p2948_p2 = pnand %p2946_p12, %p2932_p0  ;;  %p2954_p13 = scmp.lt.s32.totalorder %s2952_s11, %s2945_s29 }
  0x59   : > { %p2949_p7 = pneg %p2948_p2  ;;  %p2955_p6 = por %p2954_p13, %p2953_p4 }
  0x5b   : > { %p2956_p10 = pnand %p2955_p6, %p2949_p7 }
  0x5d   : > { %2959 = shalt.err (!%p2956_p10)
}
  0x5e   : > { %2823 = dma.hbm_to_vmem [thread:$0]  (!%p3209_p11), %s3205_s10, 256, %s3207_s28, %s209_s13  }
  0x5f   : > { %229 = sbr.rel (%p3112_p8) target bundleno = 922 (0x39a), region = 40 }
  0x66   : > { %s3241_s14 = sand.u32 1, %s3022_s19   ;;  %p4342_p4 = scmp.ne.s32.totalorder %s4335_s24, 0 }
  0x67   : > { %s2183_s15 = sshll.u32 %s3241_s14, 4  ;;  %s232_s17 = scalar_lea.sflag [#allocation3], %s3241_s14 }
  0x68   : > { %s3247_s23 = scalar_lea.vmem [#allocation2], %s2183_s15 }
  0x69   : > { %3005 = dma.done.wait (%p4342_p4), %s232_s17, 256  }
  0x6a   : > { %3007 = vsyncadd (%p4342_p4), %s232_s17, 4294967040  ;;  %p4343_p7 = scmp.eq.s32.totalorder %s3093_s22, 0 }
  0x6c   : > { %3009 = dma.done.wait (%p4343_p7), [#allocation6], 8192   ;;  %p4344_p8 = pmov %p4343_p7 }
  0x6d   : > { %v288_v0 = vld [vmem:[#allocation5 + $0x80] sm:$0xff]  ;;  %v289_v1 = vld [vmem:[#allocation5 + $0x88] sm:$0xff]  ;;  %v290_v7 = vld [vmem:[#allocation5 + $0x90] sm:$0xff]  ;;  %s2194_s12 = sshll.u32 %s3093_s22, 8  ;;  %s269_s13 = scalar_lea.vmem [#allocation8], %s2183_s15 }
  0x6e   : > { %3011 = vsyncadd (%p4344_p8), [#allocation6], 4294959104  ;;  %v272_v2 = vld [vmem:[#allocation5] sm:$0xff]  ;;  %v360_v3 = vand.u32 4294901760, %v288_v0  ;;  %v363_v4 = vand.u32 4294901760, %v289_v1  ;;  %v273_v5 = vld [vmem:[#allocation5 + $0x8] sm:$0xff]  ;;  %s4141_s8 = scalar_lea.hbm %s4190_s5, %s2194_s12 }
  0x6f   : > { %v312_v6 = vand.u32 4294901760, %v272_v2  ;;  %v291_v8 = vld [vmem:[#allocation5 + $0x98] sm:$0xff]  ;;  %v315_v9 = vand.u32 4294901760, %v273_v5  ;;  %v366_v10 = vand.u32 4294901760, %v290_v7  ;;  %v274_v12 = vld [vmem:[#allocation5 + $0x10] sm:$0xff]  ;;  %v292_v14 = vld [vmem:[#allocation5 + $0xa0] sm:$0xff] }
  0x70   : > { %v369_v11 = vand.u32 4294901760, %v291_v8  ;;  %v275_v13 = vld [vmem:[#allocation5 + $0x18] sm:$0xff]  ;;  %v3257_v15 = vpack.c.bf16 %v363_v4, %v360_v3  ;;  %v293_v16 = vld [vmem:[#allocation5 + $0xa8] sm:$0xff]  ;;  %v276_v17 = vld [vmem:[#allocation5 + $0x20] sm:$0xff]  ;;  %v3264_v22 = vsub.f32 %v288_v0, %v360_v3  ;;  %v318_v23 = vand.u32 4294901760, %v274_v12  ;;  %s2085_s7 = sshll.u32 %s269_s13, 4  ;;  %s4143_s7 = int_to_ptr.vmem [resolvable:$true] %s2085_s7 }
  0x71   : > { %v277_v18 = vld [vmem:[#allocation5 + $0x28] sm:$0xff]  ;;  %v3259_v19 = vpack.c.bf16 %v315_v9, %v312_v6  ;;  %v294_v21 = vld [vmem:[#allocation5 + $0xb0] sm:$0xff]  ;;  %v321_v24 = vand.u32 4294901760, %v275_v13  ;;  %v372_v25 = vand.u32 4294901760, %v292_v14  ;;  %v3266_v26 = vsub.f32 %v289_v1, %v363_v4  ;;  %v295_v30 = vld [vmem:[#allocation5 + $0xb8] sm:$0xff]  ;;  %s2071_s22 = scalar_lea.sflag [#allocation4], %s3241_s14 }
  0x72   : > { %4345 = vst [vmem:[#allocation12_spill] sm:$0xff] %v3257_v15  ;;  %v3261_v20 = vpack.c.bf16 %v369_v11, %v366_v10  ;;  %2406 = vmatprep.subr.bf16.mxu1 %v3257_v15  ;;  %v375_v27 = vand.u32 4294901760, %v293_v16  ;;  %v324_v28 = vand.u32 4294901760, %v276_v17  ;;  %v327_v29 = vand.u32 4294901760, %v277_v18  ;;  %v278_v31 = vld [vmem:[#allocation5 + $0x30] sm:$0xff]  ;;  %v279_v36 = vld [vmem:[#allocation5 + $0x38] sm:$0xff] }
  0x73   : > { %4346 = vst [vmem:[#allocation13_spill] sm:$0xff] %v3259_v19  ;;  %2408 = vmatpush3.bf16.msra.mxu1 %v3259_v19  ;;  %v3269_v32 = vsub.f32 %v272_v2, %v312_v6  ;;  %v3271_v33 = vsub.f32 %v273_v5, %v315_v9  ;;  %v3274_v34 = vpack.c.bf16 %v321_v24, %v318_v23  ;;  %v378_v35 = vand.u32 4294901760, %v294_v21  ;;  %v296_v37 = vld [vmem:[#allocation5 + $0xc0] sm:$0xff]  ;;  %v297_v38 = vld [vmem:[#allocation5 + $0xc8] sm:$0xff]  ;;  %v298_v53 = vld [vmem:[#allocation5 + $0xd0] sm:$0xff]  ;;  %s2960_s9 = scalar_lea.vmem %s4143_s7, 256 }
  0x74   : > { %4347 = vst [vmem:[#allocation14_spill] sm:$0xff] %v3261_v20  ;;  %2410 = vmatprep.subr.bf16.mxu1 %v3261_v20  ;;  %v3276_v39 = vsub.f32 %v290_v7, %v366_v10  ;;  %v3278_v40 = vsub.f32 %v291_v8, %v369_v11  ;;  %v3280_v41 = vsub.f32 %v274_v12, %v318_v23  ;;  %v381_v45 = vand.u32 4294901760, %v295_v30  ;;  %v280_v47 = vld [vmem:[#allocation5 + $0x40] sm:$0xff]  ;;  %v281_v48 = vld [vmem:[#allocation5 + $0x48] sm:$0xff]  ;;  %v299_v58 = vld [vmem:[#allocation5 + $0xd8] sm:$0xff]  ;;  %p2961_p11 = scmp.ne.s32.totalorder %s4143_s7, %s2960_s9  ;;  %p4522_p0 = scmp.ne.s32.totalorder %s4340_s30, 0 }
  0x75   : > { %4348 = vst [vmem:[#allocation15_spill] sm:$0xff] %v3274_v34  ;;  %v3282_v42 = vpack.c.bf16 %v375_v27, %v372_v25  ;;  %v3284_v43 = vsub.f32 %v275_v13, %v321_v24  ;;  %v3286_v44 = vsub.f32 %v292_v14, %v372_v25  ;;  %v330_v46 = vand.u32 4294901760, %v278_v31  ;;  %v282_v59 = vld [vmem:[#allocation5 + $0x50] sm:$0xff]  ;;  %v283_v60 = vld [vmem:[#allocation5 + $0x58] sm:$0xff]  ;;  %v300_v1 = vld [vmem:[#allocation5 + $0xe0] sm:$0xff]  ;;  %s3041_s11 = smov [#allocation8]  }
  0x76   : > { %v3289_v49 = vpack.c.bf16 %v327_v29, %v324_v28  ;;  %v333_v50 = vand.u32 4294901760, %v279_v36  ;;  %v384_v51 = vand.u32 4294901760, %v296_v37  ;;  %v387_v52 = vand.u32 4294901760, %v297_v38  ;;  %v301_v2 = vld [vmem:[#allocation5 + $0xe8] sm:$0xff]  ;;  %v284_v7 = vld [vmem:[#allocation5 + $0x60] sm:$0xff]  ;;  %v302_v25 = vld [vmem:[#allocation5 + $0xf0] sm:$0xff]  ;;  %p2962_p1 = pnand %p2961_p11, %p4522_p0 }
  0x77   : > { %4349 = vst [vmem:[#allocation16_spill] sm:$0xff] %v3282_v42  ;;  %2412 = vmatpush3.bf16.msra.mxu1 %v3274_v34  ;;  %v3292_v54 = vsub.f32 %v293_v16, %v375_v27  ;;  %v3294_v55 = vsub.f32 %v276_v17, %v324_v28  ;;  %v3296_v56 = vsub.f32 %v277_v18, %v327_v29  ;;  %v336_v63 = vand.u32 4294901760, %v280_v47  ;;  %v285_v12 = vld [vmem:[#allocation5 + $0x68] sm:$0xff]  ;;  %v3324_v27 = vld [vmem:[#allocation5 + $0xf8] sm:$0xff]  ;;  %s2964_s15 = sshll.u32 %s3041_s11, 4  ;;  %s2965_s15 = int_to_ptr.vmem [resolvable:$false] %s2964_s15 }
  0x78   : > { %4350 = vst [vmem:[#allocation17_spill] sm:$0xff] %v3289_v49  ;;  %2414 = vmatprep.subr.bf16.mxu1 %v3282_v42  ;;  %v3298_v57 = vpack.c.bf16 %v381_v45, %v378_v35  ;;  %v3300_v61 = vsub.f32 %v294_v21, %v378_v35  ;;  %v3302_v62 = vsub.f32 %v295_v30, %v381_v45  ;;  %v339_v0 = vand.u32 4294901760, %v281_v48  ;;  %v271_v35 = vld [vmem:[%s3247_s23 + $0x8] sm:$0xff]  ;;  %p2963_p3 = pneg %p2962_p1  ;;  %s2966_s17 = scalar_lea.vmem %s2965_s15, 512 }
  0x79   : > { %v3304_v3 = vpack.c.bf16 %v333_v50, %v330_v46  ;;  %v3306_v4 = vsub.f32 %v278_v31, %v330_v46  ;;  %v3308_v5 = vsub.f32 %v279_v36, %v333_v50  ;;  %v3310_v6 = vpack.c.bf16 %v387_v52, %v384_v51  ;;  %v270_v36 = vld [vmem:[%s3247_s23] sm:$0xff]  ;;  %p2967_p5 = scmp.lt.s32.totalorder %s4143_s7, %s2965_s15  ;;  %p2968_p9 = scmp.lt.s32.totalorder %s2966_s17, %s2960_s9 }
  0x7a   : > { %4351 = vst [vmem:[#allocation18_spill] sm:$0xff] %v3298_v57  ;;  %v390_v8 = vand.u32 4294901760, %v298_v53  ;;  %v393_v9 = vand.u32 4294901760, %v299_v58  ;;  %v342_v10 = vand.u32 4294901760, %v282_v59  ;;  %v345_v11 = vand.u32 4294901760, %v283_v60 }
  0x7b   : > { %4352 = vst [vmem:[#allocation19_spill] sm:$0xff] %v3304_v3  ;;  %4353 = vst [vmem:[#allocation20_spill] sm:$0xff] %v3310_v6  ;;  %2416 = vmatpush3.bf16.msra.mxu1 %v3289_v49  ;;  %v3314_v13 = vsub.f32 %v296_v37, %v384_v51  ;;  %v3316_v14 = vsub.f32 %v297_v38, %v387_v52  ;;  %v396_v16 = vand.u32 4294901760, %v300_v1  ;;  %v399_v17 = vand.u32 4294901760, %v301_v2  ;;  %p2969_p12 = por %p2968_p9, %p2967_p5 }
  0x7c   : > { %2418 = vmatprep.subr.bf16.mxu1 %v3298_v57  ;;  %v3318_v18 = vpack.c.bf16 %v339_v0, %v336_v63  ;;  %v3320_v21 = vsub.f32 %v280_v47, %v336_v63  ;;  %v3322_v23 = vsub.f32 %v281_v48, %v339_v0  ;;  %v348_v24 = vand.u32 4294901760, %v284_v7  ;;  %v3343_v47 = vld [vmem:[#allocation5 + $0x70] sm:$0xff] }
  0x7d   : > { %v3326_v28 = vpack.c.bf16 %v393_v9, %v390_v8  ;;  %v3328_v29 = vsub.f32 %v298_v53, %v390_v8  ;;  %v3330_v30 = vsub.f32 %v299_v58, %v393_v9  ;;  %v351_v31 = vand.u32 4294901760, %v285_v12  ;;  %v3351_v53 = vld [vmem:[#allocation5 + $0x78] sm:$0xff]  ;;  %p2970_p2 = pnand %p2969_p12, %p2963_p3 }
  0x7e   : > { %4354 = vst [vmem:[#allocation21_spill] sm:$0xff] %v3318_v18  ;;  %v3335_v37 = vpack.c.bf16 %v345_v11, %v342_v10  ;;  %v3337_v38 = vsub.f32 %v282_v59, %v342_v10  ;;  %v3339_v45 = vsub.f32 %v283_v60, %v345_v11  ;;  %v3341_v46 = vpack.c.bf16 %v399_v17, %v396_v16 }
  0x7f   : > { %4355 = vst [vmem:[#allocation22_spill] sm:$0xff] %v3326_v28  ;;  %2420 = vmatpush3.bf16.msra.mxu1 %v3304_v3  ;;  %v3346_v48 = vsub.f32 %v300_v1, %v396_v16  ;;  %v3348_v50 = vsub.f32 %v301_v2, %v399_v17  ;;  %v402_v51 = vand.u32 4294901760, %v302_v25  ;;  %v4194_v52 = vand.u32 4294901760, %v3324_v27 }
  0x80   : > { %4356 = vst [vmem:[#allocation23_spill] sm:$0xff] %v3335_v37  ;;  %4357 = vst [vmem:[#allocation24_spill] sm:$0xff] %v3341_v46  ;;  %2422 = vmatprep.subr.bf16.mxu1 %v3310_v6  ;;  %v3353_v58 = vand.u32 4294901760, %v271_v35  ;;  %v3355_v59 = vand.u32 4294901760, %v270_v36  ;;  %v4195_v60 = vand.u32 4294901760, %v3264_v22  ;;  %v4196_v63 = vand.u32 4294901760, %v3266_v26 }
  0x81   : > { %4358 = vst [vmem:[#allocation25_spill] sm:$0xff] %v3346_v48  ;;  %4359 = vst [vmem:[#allocation26_spill] sm:$0xff] %v3348_v50  ;;  %v3359_v0 = vpack.c.bf16 %v351_v31, %v348_v24  ;;  %v3361_v8 = vsub.f32 %v284_v7, %v348_v24  ;;  %v3363_v1 = vsub.f32 %v285_v12, %v351_v31  ;;  %v4197_v17 = vand.u32 4294901760, %v3269_v32 }
  0x82   : > { %4360 = vst [vmem:[#allocation27_spill] sm:$0xff] %v3353_v58  ;;  %v3369_v9 = vpack.c.bf16 %v4194_v52, %v402_v51  ;;  %v3373_v11 = vsub.f32 %v271_v35, %v3353_v58  ;;  %v3376_v16 = vsub.f32 %v270_v36, %v3355_v59  ;;  %v539_v7 = vsub.f32 %v3264_v22, %v4195_v60 }
  0x83   : > { %4361 = vst [vmem:[#allocation28_spill] sm:$0xff] %v3359_v0  ;;  %4362 = vst [vmem:[#allocation29_spill] sm:$0xff] %v3361_v8  ;;  %2424 = vmatpush3.bf16.msra.mxu1 %v3318_v18  ;;  %v546_v12 = vsub.f32 %v3266_v26, %v4196_v63  ;;  %v4200_v24 = vand.u32 4294901760, %v3271_v33  ;;  %v427_v60 = vsub.f32 %v3269_v32, %v4197_v17  ;;  %v4368_v17 = vand.u32 4294901760, %v3278_v40 }
  0x84   : > { %4363 = vst [vmem:[#allocation30_spill] sm:$0xff] %v3363_v1  ;;  %4364 = vst [vmem:[#allocation31_spill] sm:$0xff] %v3369_v9  ;;  %2426 = vmatprep.subr.bf16.mxu1 %v3326_v28  ;;  %v4203_v31 = vand.u32 4294901760, %v3373_v11  ;;  %v540_v10 = vand.u32 4294901760, %v539_v7  ;;  %v4366_v36 = vand.u32 4294901760, %v3376_v16  ;;  %v4367_v7 = vand.u32 4294901760, %v3276_v39 }
  0x85   : > { %4365 = vst [vmem:[#allocation32_spill] sm:$0xff] %v3376_v16  ;;  %v547_v2 = vand.u32 4294901760, %v546_v12  ;;  %v434_v63 = vsub.f32 %v3271_v33, %v4200_v24  ;;  %v560_v28 = vsub.f32 %v3278_v40, %v4368_v17  ;;  %v3411_v24 = vsub.f32 %v302_v25, %v402_v51 }
  0x86   : > { %v410_v35 = vsub.f32 %v3373_v11, %v4203_v31  ;;  %v416_v52 = vsub.f32 %v3376_v16, %v4366_v36  ;;  %v553_v12 = vsub.f32 %v3276_v39, %v4367_v7  ;;  %v4370_v31 = vand.u32 4294901760, %v3351_v53 }
  0x87   : > { %2428 = vmatpush3.bf16.msra.mxu1 %v3335_v37  ;;  %v4369_v37 = vand.u32 4294901760, %v3343_v47  ;;  %v2437_v6 = vpack.c.bf16 %v547_v2, %v540_v10  ;;  %v4217_v36 = vand.u32 4294901760, %v3280_v41  ;;  %v428_v7 = vand.u32 4294901760, %v427_v60 }
  0x88   : > { %2430 = vmatprep.subr.bf16.mxu1 %v3341_v46  ;;  %v411_v3 = vand.u32 4294901760, %v410_v35  ;;  %v417_v57 = vand.u32 4294901760, %v416_v52  ;;  %v435_v49 = vand.u32 4294901760, %v434_v63  ;;  %v554_v42 = vand.u32 4294901760, %v553_v12 }
  0x89   : > { %v3417_v18 = vpack.c.bf16 %v4370_v31, %v4369_v37  ;;  %v441_v17 = vsub.f32 %v3280_v41, %v4217_v36  ;;  %v4216_v25 = vand.u32 4294901760, %v3284_v43  ;;  %v4218_v51 = vand.u32 4294901760, %v3286_v44 }
  0x8a   : > { %412 = vmatprep.mubr.f32.mxu1 %v411_v3  ;;  %v561_v37 = vand.u32 4294901760, %v560_v28  ;;  %v4221_v2 = vand.u32 4294901760, %v3292_v54  ;;  %v4226_v10 = vand.u32 4294901760, %v3294_v55  ;;  %v4227_v52 = vand.u32 4294901760, %v3296_v56 }
  0x8b   : > { %4371 = vst [vmem:[#allocation33_spill] sm:$0xff] %v3417_v18  ;;  %2432 = vmatpush3.bf16.msra.mxu1 %v3359_v0  ;;  %v442_v60 = vand.u32 4294901760, %v441_v17  ;;  %v448_v63 = vsub.f32 %v3284_v43, %v4216_v25  ;;  %v567_v31 = vsub.f32 %v3286_v44, %v4218_v51  ;;  %v4230_v3 = vand.u32 4294901760, %v3300_v61 }
  0x8c   : > { %2434 = vmatprep.subr.bf16.mxu1 %v3369_v9  ;;  %v574_v28 = vsub.f32 %v3292_v54, %v4221_v2  ;;  %v455_v35 = vsub.f32 %v3294_v55, %v4226_v10  ;;  %v462_v12 = vsub.f32 %v3296_v56, %v4227_v52  ;;  %v4242_v17 = vand.u32 4294901760, %v3302_v62 }
  0x8d   : > { %v449_v25 = vand.u32 4294901760, %v448_v63  ;;  %v568_v36 = vand.u32 4294901760, %v567_v31  ;;  %v581_v51 = vsub.f32 %v3300_v61, %v4230_v3  ;;  %v4241_v9 = vand.u32 4294901760, %v3306_v4 }
  0x8e   : > { %v2439_v2 = vpack.c.bf16 %v435_v49, %v428_v7  ;;  %v2441_v0 = vpack.c.bf16 %v561_v37, %v554_v42  ;;  %v575_v46 = vand.u32 4294901760, %v574_v28  ;;  %v588_v10 = vsub.f32 %v3302_v62, %v4242_v17 }
  0x8f   : > { %2436 = vmatpush3.bf16.msra.mxu1 %v3417_v18  ;;  %v456_v52 = vand.u32 4294901760, %v455_v35  ;;  %v463_v34 = vand.u32 4294901760, %v462_v12  ;;  %v469_v63 = vsub.f32 %v3306_v4, %v4241_v9  ;;  %v4240_v31 = vand.u32 4294901760, %v3308_v5 }
  0x90   : > { %2438 = vmatprep.subr.bf16.mxu1 %v2437_v6  ;;  %v2443_v3 = vpack.c.bf16 %v449_v25, %v442_v60  ;;  %v2445_v20 = vpack.c.bf16 %v575_v46, %v568_v36  ;;  %v582_v19 = vand.u32 4294901760, %v581_v51  ;;  %v4238_v49 = vand.u32 4294901760, %v3314_v13 }
  0x91   : > { %v589_v42 = vand.u32 4294901760, %v588_v10  ;;  %v476_v7 = vsub.f32 %v3308_v5, %v4240_v31  ;;  %v4236_v6 = vand.u32 4294901760, %v3316_v14  ;;  %v4235_v37 = vand.u32 4294901760, %v3320_v21 }
  0x92   : > { %418 = vmatmul.mubr.f32.vlgmr.msra.gmra.mrb[0].mxu1 %v417_v57  ;;  %v470_v28 = vand.u32 4294901760, %v469_v63  ;;  %v595_v25 = vsub.f32 %v3314_v13, %v4238_v49  ;;  %v4237_v46 = vand.u32 4294901760, %v3322_v23  ;;  %v4239_v36 = vand.u32 4294901760, %v3328_v29 }
  0x93   : > { %2440 = vmatpush3.bf16.msra.mxu1 %v2439_v2  ;;  %648 = vmatprep.mubr.f32.mxu1 %v3353_v58  ;;  %v477_v57 = vand.u32 4294901760, %v476_v7  ;;  %v602_v51 = vsub.f32 %v3316_v14, %v4236_v6  ;;  %v483_v2 = vsub.f32 %v3320_v21, %v4235_v37  ;;  %v4243_v10 = vand.u32 4294901760, %v3330_v30 }
  0x94   : > { %2442 = vmatprep.subr.bf16.mxu1 %v2441_v0  ;;  %v4372_v60 = vand.u32 4294901760, %v3324_v27  ;;  %v490_v0 = vsub.f32 %v3322_v23, %v4237_v46  ;;  %v609_v12 = vsub.f32 %v3328_v29, %v4239_v36  ;;  %v4374_v7 = vand.u32 4294901760, %v3343_v47 }
  0x95   : > { %v4375_v6 = vand.u32 4294901760, %v3351_v53  ;;  %v616_v46 = vsub.f32 %v3330_v30, %v4243_v10  ;;  %v2449_v49 = vpack.c.bf16 %v589_v42, %v582_v19  ;;  %v2451_v36 = vpack.c.bf16 %v477_v57, %v470_v28 }
  0x96   : > { %v3481_v35 = vsub.f32 %v3324_v27, %v4372_v60  ;;  %v3493_v37 = vsub.f32 %v3343_v47, %v4374_v7  ;;  %v2447_v60 = vpack.c.bf16 %v463_v34, %v456_v52  ;;  %v596_v31 = vand.u32 4294901760, %v595_v25 }
  0x97   : > { %v3498_v27 = vsub.f32 %v3351_v53, %v4375_v6  ;;  %2444 = vmatpush3.bf16.msra.mxu1 %v2443_v3  ;;  %v503_v9 = vand.u32 4294901760, %v3339_v45  ;;  %v603_v17 = vand.u32 4294901760, %v602_v51  ;;  %v484_v47 = vand.u32 4294901760, %v483_v2 }
  0x98   : > { %4373 = vst [vmem:[#allocation34_spill] sm:$0xff] %v3481_v35  ;;  %2446 = vmatprep.subr.bf16.mxu1 %v2445_v20  ;;  %v622_v7 = vand.u32 4294901760, %v3346_v48  ;;  %v629_v63 = vand.u32 4294901760, %v3348_v50  ;;  %v491_v53 = vand.u32 4294901760, %v490_v0  ;;  %v610_v6 = vand.u32 4294901760, %v609_v12 }
  0x99   : > { %v4376_v34 = vand.u32 4294901760, %v3337_v38  ;;  %v510_v3 = vand.u32 4294901760, %v3361_v8  ;;  %v617_v19 = vand.u32 4294901760, %v616_v46  ;;  %v504_v42 = vsub.f32 %v3339_v45, %v503_v9 }
  0x9a   : > { %v623_v28 = vsub.f32 %v3346_v48, %v622_v7  ;;  %v517_v20 = vand.u32 4294901760, %v3363_v1  ;;  %v630_v25 = vsub.f32 %v3348_v50, %v629_v63  ;;  %v636_v51 = vand.u32 4294901760, %v3411_v24 }
  0x9b   : > { %v497_v52 = vsub.f32 %v3337_v38, %v4376_v34  ;;  %2448 = vmatpush3.bf16.msra.mxu1 %v2447_v60  ;;  %v511_v57 = vsub.f32 %v3361_v8, %v510_v3  ;;  %v643_v2 = vand.u32 4294901760, %v3481_v35  ;;  %v2453_v0 = vpack.c.bf16 %v603_v17, %v596_v31 }
  0x9c   : > { %2450 = vmatprep.subr.bf16.mxu1 %v2449_v49  ;;  %v518_v12 = vsub.f32 %v3363_v1, %v517_v20  ;;  %v524_v46 = vand.u32 4294901760, %v3493_v37  ;;  %v2455_v34 = vpack.c.bf16 %v491_v53, %v484_v47  ;;  %v637_v10 = vsub.f32 %v3411_v24, %v636_v51 }
  0x9d   : > { %v644_v58 = vsub.f32 %v3481_v35, %v643_v2  ;;  %v2457_v60 = vpack.c.bf16 %v617_v19, %v610_v6  ;;  %v498_v18 = vand.u32 4294901760, %v497_v52  ;;  %v505_v16 = vand.u32 4294901760, %v504_v42 }
  0x9e   : > { %v531_v15 = vand.u32 4294901760, %v3498_v27  ;;  %v624_v8 = vand.u32 4294901760, %v623_v28  ;;  %v631_v50 = vand.u32 4294901760, %v630_v25  ;;  %v512_v48 = vand.u32 4294901760, %v511_v57 }
  0x9f   : > { %2452 = vmatpush3.bf16.msra.mxu1 %v2451_v36  ;;  %v519_v49 = vand.u32 4294901760, %v518_v12  ;;  %v638_v17 = vand.u32 4294901760, %v637_v10  ;;  %v645_v31 = vand.u32 4294901760, %v644_v58  ;;  %v525_v1 = vsub.f32 %v3493_v37, %v524_v46 }
  0xa0   : > { %2454 = vmatprep.subr.bf16.mxu1 %v2453_v0  ;;  %v532_v47 = vsub.f32 %v3498_v27, %v531_v15  ;;  %v2459_v53 = vpack.c.bf16 %v505_v16, %v498_v18  ;;  %v2461_v35 = vpack.c.bf16 %v631_v50, %v624_v8  ;;  %v4377_v36 = vand.u32 4294901760, %v3264_v22 }
  0xa1   : > { %v2463_v6 = vpack.c.bf16 %v519_v49, %v512_v48  ;;  %v2465_v52 = vpack.c.bf16 %v645_v31, %v638_v17  ;;  %v526_v19 = vand.u32 4294901760, %v525_v1  ;;  %v4378_v28 = vand.u32 4294901760, %v3266_v26 }
  0xa2   : > { %v533_v42 = vand.u32 4294901760, %v532_v47  ;;  %v4379_v58 = vand.u32 4294901760, %v3269_v32  ;;  %v4380_v10 = vand.u32 4294901760, %v3271_v33  ;;  %v4381_v18 = vand.u32 4294901760, %v3276_v39 }
  0xa3   : > { %2456 = vmatpush3.bf16.msra.mxu1 %v2455_v34  ;;  %v3528_v25 = vpack.c.bf16 %v4378_v28, %v4377_v36  ;;  %v4382_v50 = vand.u32 4294901760, %v3278_v40  ;;  %v4383_v8 = vand.u32 4294901760, %v3280_v41  ;;  %v4384_v1 = vand.u32 4294901760, %v3284_v43 }
  0xa4   : > { %2458 = vmatprep.subr.bf16.mxu1 %v2457_v60  ;;  %v3534_v57 = vpack.c.bf16 %v4380_v10, %v4379_v58  ;;  %v4385_v0 = vand.u32 4294901760, %v3286_v44  ;;  %v4386_v12 = vand.u32 4294901760, %v3292_v54  ;;  %v4387_v60 = vand.u32 4294901760, %v3294_v55 }
  0xa5   : > { %v3540_v48 = vpack.c.bf16 %v4382_v50, %v4381_v18  ;;  %v3546_v16 = vpack.c.bf16 %v4384_v1, %v4383_v8  ;;  %v4388_v49 = vand.u32 4294901760, %v3296_v56  ;;  %v4389_v31 = vand.u32 4294901760, %v3300_v61 }
  0xa6   : > { %v3552_v34 = vpack.c.bf16 %v4386_v12, %v4385_v0  ;;  %v4390_v47 = vand.u32 4294901760, %v3302_v62  ;;  %v4391_v28 = vand.u32 4294901760, %v3306_v4  ;;  %v4392_v58 = vand.u32 4294901760, %v3308_v5 }
  0xa7   : > { %v3558_v17 = vpack.c.bf16 %v4388_v49, %v4387_v60  ;;  %2460 = vmatpush3.bf16.msra.mxu1 %v2459_v53  ;;  %v4393_v18 = vand.u32 4294901760, %v3314_v13  ;;  %v4394_v50 = vand.u32 4294901760, %v3316_v14  ;;  %v4395_v1 = vand.u32 4294901760, %v3320_v21 }
  0xa8   : > { %v3564_v36 = vpack.c.bf16 %v4390_v47, %v4389_v31  ;;  %v3570_v10 = vpack.c.bf16 %v4392_v58, %v4391_v28  ;;  %v4396_v0 = vand.u32 4294901760, %v3322_v23  ;;  %v4397_v60 = vand.u32 4294901760, %v3328_v29  ;;  %2462 = vmatprep.subr.bf16.mxu1 %v2461_v35 }
  0xa9   : > { %v3576_v8 = vpack.c.bf16 %v4394_v50, %v4393_v18  ;;  %v4398_v49 = vand.u32 4294901760, %v3330_v30  ;;  %v4399_v53 = vand.u32 4294901760, %v3337_v38  ;;  %v3594_v28 = vpack.c.bf16 %v629_v63, %v622_v7  ;;  %v4414_v63 = vld [vmem:[#allocation19_spill] sm:$0xff]  ;;  %v4416_v7 = vld [vmem:[#allocation21_spill] sm:$0xff] }
  0xaa   : > { %v3582_v12 = vpack.c.bf16 %v4396_v0, %v4395_v1  ;;  %v3596_v58 = vpack.c.bf16 %v517_v20, %v510_v3  ;;  %v3598_v18 = vpack.c.bf16 %v643_v2, %v636_v51  ;;  %v3600_v50 = vpack.c.bf16 %v531_v15, %v524_v46  ;;  %v4417_v3 = vld [vmem:[#allocation22_spill] sm:$0xff]  ;;  %v4419_v20 = vld [vmem:[#allocation24_spill] sm:$0xff]  ;;  %v4421_v2 = vld [vmem:[#allocation31_spill] sm:$0xff] }
  0xab   : > { %v3588_v31 = vpack.c.bf16 %v4398_v49, %v4397_v60  ;;  %v3592_v47 = vpack.c.bf16 %v503_v9, %v4399_v53  ;;  %2464 = vmatpush3.bf16.msra.mxu1 %v2463_v6  ;;  %v2467_v1 = vpack.c.bf16 %v533_v42, %v526_v19  ;;  %v2469_v0 = vpack.c.bf16 %v3266_v26, %v3264_v22  ;;  %v4420_v51 = vld [vmem:[#allocation28_spill] sm:$0xff]  ;;  %v4422_v46 = vld [vmem:[#allocation33_spill] sm:$0xff]  ;;  %v1181_v53 = vld [vmem:[#allocation7 + $0x30] sm:$0xff] }
  0xac   : > { %2466 = vmatprep.subr.bf16.mxu1 %v2465_v52  ;;  %v2471_v9 = vpack.c.bf16 %v3271_v33, %v3269_v32  ;;  %v2473_v35 = vpack.c.bf16 %v3278_v40, %v3276_v39  ;;  %v2475_v15 = vpack.c.bf16 %v3284_v43, %v3280_v41  ;;  %v2477_v22 = vpack.c.bf16 %v3292_v54, %v3286_v44  ;;  %v4400_v44 = vld [vmem:[#allocation25_spill] sm:$0xff]  ;;  %v4401_v54 = vld [vmem:[#allocation26_spill] sm:$0xff]  ;;  %v4424_v52 = vld [vmem:[#allocation27_spill] sm:$0xff] }
  0xad   : > { %v2479_v26 = vpack.c.bf16 %v3296_v56, %v3294_v55  ;;  %v2481_v32 = vpack.c.bf16 %v3302_v62, %v3300_v61  ;;  %v2483_v33 = vpack.c.bf16 %v3308_v5, %v3306_v4  ;;  %v2485_v39 = vpack.c.bf16 %v3316_v14, %v3314_v13  ;;  %v4402_v56 = vld [vmem:[#allocation29_spill] sm:$0xff]  ;;  %v4403_v61 = vld [vmem:[#allocation30_spill] sm:$0xff]  ;;  %v4405_v14 = vld [vmem:[#allocation12_spill] sm:$0xff] }
  0xae   : > { %v2487_v40 = vpack.c.bf16 %v3322_v23, %v3320_v21  ;;  %v2489_v41 = vpack.c.bf16 %v3330_v30, %v3328_v29  ;;  %v2491_v43 = vpack.c.bf16 %v3339_v45, %v3337_v38  ;;  %v2493_v55 = vpack.c.bf16 %v4401_v54, %v4400_v44  ;;  %v4404_v4 = vld [vmem:[#allocation34_spill] sm:$0xff]  ;;  %v4406_v21 = vld [vmem:[#allocation32_spill] sm:$0xff]  ;;  %v4407_v23 = vld [vmem:[#allocation13_spill] sm:$0xff] }
  0xaf   : > { %2468 = vmatpush3.bf16.msra.mxu1 %v2467_v1  ;;  %v2495_v62 = vpack.c.bf16 %v4403_v61, %v4402_v56  ;;  %v2497_v5 = vpack.c.bf16 %v4404_v4, %v3411_v24  ;;  %v2499_v13 = vpack.c.bf16 %v3498_v27, %v3493_v37  ;;  %v4408_v29 = vand.u32 4294901760, %v3373_v11  ;;  %v4409_v30 = vld [vmem:[#allocation14_spill] sm:$0xff]  ;;  %v4410_v38 = vld [vmem:[#allocation15_spill] sm:$0xff]  ;;  %v4411_v45 = vld [vmem:[#allocation16_spill] sm:$0xff] }
  0xb0   : > { %2470 = vmatprep.subr.bf16.mxu1 %v2469_v0  ;;  %v4412_v24 = vld [vmem:[#allocation17_spill] sm:$0xff]  ;;  %v4413_v37 = vld [vmem:[#allocation18_spill] sm:$0xff]  ;;  %v4415_v27 = vld [vmem:[#allocation20_spill] sm:$0xff]  ;;  %v4423_v6 = vand.u32 4294901760, %v4406_v21 }
  0xb1   : > { %v1185_v1 = vld [vmem:[#allocation7 + $0x50] sm:$0xff]  ;;  %v1190_v44 = vld [vmem:[#allocation7 + $0x78] sm:$0xff] }
  0xb2   : > { %650 = vmatmul.mubr.f32.vlgmr.msra.gmra.mrb[2].mxu1 %v3355_v59 }
  0xb3   : > { %2472 = vmatpush3.bf16.msra.mxu1 %v2471_v9  ;;  %785 = vmatprep.mubr.f32.mxu1 %v3373_v11  ;;  %v4418_v11 = vld [vmem:[#allocation23_spill] sm:$0xff] }
  0xb4   : > { %2474 = vmatprep.subr.bf16.mxu1 %v2473_v35 }
  0xb7   : > { %2476 = vmatpush3.bf16.msra.mxu1 %v2475_v15 }
  0xb8   : > { %2478 = vmatprep.subr.bf16.mxu1 %v2477_v22  ;;  %v1188_v22 = vld [vmem:[#allocation7 + $0x68] sm:$0xff] }
  0xb9   : > { %v1243_v54 = vand.u32 4294901760, %v1188_v22 }
  0xbb   : > { %2480 = vmatpush3.bf16.msra.mxu1 %v2479_v26 }
  0xbc   : > { %2482 = vmatprep.subr.bf16.mxu1 %v2481_v32 }
  0xbf   : > { %2484 = vmatpush3.bf16.msra.mxu1 %v2483_v33  ;;  %v1233_v33 = vand.u32 4294901760, %v1181_v53 }
  0xc0   : > { %2486 = vmatprep.subr.bf16.mxu1 %v2485_v39 }
  0xc3   : > { %2488 = vmatpush3.bf16.msra.mxu1 %v2487_v40 }
  0xc4   : > { %2490 = vmatprep.subr.bf16.mxu1 %v2489_v41 }
  0xc7   : > { %2492 = vmatpush3.bf16.msra.mxu1 %v2491_v43  ;;  %v1241_v43 = vand.u32 4294901760, %v1185_v1 }
  0xc8   : > { %2494 = vmatprep.subr.bf16.mxu1 %v2493_v55  ;;  %v1187_v55 = vld [vmem:[#allocation7 + $0x60] sm:$0xff] }
  0xcb   : > { %2496 = vmatpush3.bf16.msra.mxu1 %v2495_v62  ;;  %v3726_v62 = vsub.f32 %v1181_v53, %v1233_v33  ;;  %v1197_v53 = vld [vmem:[#allocation7 + $0xb0] sm:$0xff] }
  0xcc   : > { %2498 = vmatprep.subr.bf16.mxu1 %v2497_v5  ;;  %v1189_v5 = vld [vmem:[#allocation7 + $0x70] sm:$0xff] }
  0xcf   : > { %2500 = vmatpush3.bf16.msra.mxu1 %v2499_v13  ;;  %v1192_v13 = vld [vmem:[#allocation7 + $0x88] sm:$0xff] }
  0xd0   : > { %2502 = vmatprep.subr.bf16.mxu1 %v4405_v14 }
  0xd2   : > { %788 = vmatmul.mubr.f32.vlgmr.msra.gmra.mrb[4].mxu1 %v4406_v21 }
  0xd3   : > { %2504 = vmatpush3.bf16.msra.mxu1 %v4407_v23  ;;  %892 = vmatprep.mubr.f32.mxu1 %v4408_v29  ;;  %v1194_v29 = vld [vmem:[#allocation7 + $0x98] sm:$0xff] }
  0xd4   : > { %2506 = vmatprep.subr.bf16.mxu1 %v4409_v30 }
  0xd7   : > { %2508 = vmatpush3.bf16.msra.mxu1 %v4410_v38 }
  0xd8   : > { %2510 = vmatprep.subr.bf16.mxu1 %v4411_v45 }
  0xdb   : > { %2512 = vmatpush3.bf16.msra.mxu1 %v4412_v24 }
  0xdc   : > { %2514 = vmatprep.subr.bf16.mxu1 %v4413_v37 }
  0xdf   : > { %2516 = vmatpush3.bf16.msra.mxu1 %v4414_v63 }
  0xe0   : > { %2518 = vmatprep.subr.bf16.mxu1 %v4415_v27 }
  0xe3   : > { %2520 = vmatpush3.bf16.msra.mxu1 %v4416_v7 }
  0xe4   : > { %2522 = vmatprep.subr.bf16.mxu1 %v4417_v3 }
  0xe7   : > { %2524 = vmatpush3.bf16.msra.mxu1 %v4418_v11 }
  0xe8   : > { %2526 = vmatprep.subr.bf16.mxu1 %v4419_v20 }
  0xeb   : > { %2528 = vmatpush3.bf16.msra.mxu1 %v4420_v51 }
  0xec   : > { %2530 = vmatprep.subr.bf16.mxu1 %v4421_v2 }
  0xef   : > { %2532 = vmatpush3.bf16.msra.mxu1 %v4422_v46 }
  0xf0   : > { %2534 = vmatprep.subr.bf16.mxu1 %v3528_v25 }
  0xf2   : > { %896 = vmatmul.mubr.f32.vlgmr.msra.gmra.mrb[6].mxu1 %v4423_v6 }
  0xf3   : > { %2536 = vmatpush3.bf16.msra.mxu1 %v3534_v57  ;;  %1062 = vmatprep.mubr.f32.mxu1 %v4424_v52  ;;  %v3695_v57 = vld [vmem:[#allocation7 + $0x8] sm:$0xff] }
  0xf4   : > { %2538 = vmatprep.subr.bf16.mxu1 %v3540_v48  ;;  %v3697_v48 = vld [vmem:[#allocation7 + $0x18] sm:$0xff] }
  0xf7   : > { %2540 = vmatpush3.bf16.msra.mxu1 %v3546_v16  ;;  %v1175_v16 = vld [vmem:[#allocation7] sm:$0xff] }
  0xf8   : > { %2542 = vmatprep.subr.bf16.mxu1 %v3552_v34  ;;  %v1219_v34 = vand.u32 4294901760, %v3695_v57 }
  0xfb   : > { %2544 = vmatpush3.bf16.msra.mxu1 %v3558_v17  ;;  %v1223_v17 = vand.u32 4294901760, %v3697_v48 }
  0xfc   : > { %2546 = vmatprep.subr.bf16.mxu1 %v3564_v36  ;;  %v1177_v36 = vld [vmem:[#allocation7 + $0x10] sm:$0xff] }
  0xfd   : > { %v1225_v60 = vand.u32 4294901760, %v1177_v36 }
  0xff   : > { %2548 = vmatpush3.bf16.msra.mxu1 %v3570_v10  ;;  %v1221_v10 = vand.u32 4294901760, %v1175_v16  ;;  %v3711_v9 = vsub.f32 %v1177_v36, %v1225_v60 }
 0x100   : > { %2550 = vmatprep.subr.bf16.mxu1 %v3576_v8  ;;  %v1180_v8 = vld [vmem:[#allocation7 + $0x28] sm:$0xff] }
 0x101   : > { %v1227_v49 = vand.u32 4294901760, %v1180_v8  ;;  %v3709_v0 = vpack.c.bf16 %v1225_v60, %v1221_v10  ;;  %v2187_v60 = vld [vmem:[%s4187_s2] ss:$0 sm:$0xff] }
 0x103   : > { %2552 = vmatpush3.bf16.msra.mxu1 %v3582_v12  ;;  %v1182_v12 = vld [vmem:[#allocation7 + $0x38] sm:$0xff]  ;;  %4425 = vst [vmem:[#allocation25_spill] sm:$0xff] %v3709_v0  ;;  %v3715_v15 = vsub.f32 %v1180_v8, %v1227_v49  ;;  %v1196_v8 = vld [vmem:[#allocation7 + $0xa8] sm:$0xff] }
 0x104   : > { %2554 = vmatprep.subr.bf16.mxu1 %v3588_v31  ;;  %v1179_v31 = vld [vmem:[#allocation7 + $0x20] sm:$0xff] }
 0x105   : > { %v1229_v32 = vand.u32 4294901760, %v1179_v31 }
 0x107   : > { %2556 = vmatpush3.bf16.msra.mxu1 %v3592_v47  ;;  %v1184_v47 = vld [vmem:[#allocation7 + $0x48] sm:$0xff]  ;;  %v3722_v56 = vpack.c.bf16 %v1233_v33, %v1229_v32  ;;  %v3724_v61 = vsub.f32 %v1179_v31, %v1229_v32  ;;  %v1195_v31 = vld [vmem:[#allocation7 + $0xa0] sm:$0xff] }
 0x108   : > { %2558 = vmatprep.subr.bf16.mxu1 %v3594_v28  ;;  %v3705_v28 = vpack.c.bf16 %v1223_v17, %v1219_v34  ;;  %v1235_v39 = vand.u32 4294901760, %v1184_v47 }
 0x109   : > { %4427 = vst [vmem:[#allocation29_spill] sm:$0xff] %v3722_v56 }
 0x10a   : > { %2598 = vmatprep.subr.bf16.mxu0 %v3705_v28  ;;  %v3728_v4 = vsub.f32 %v1184_v47, %v1235_v39 }
 0x10b   : > { %2560 = vmatpush3.bf16.msra.mxu1 %v3596_v58  ;;  %v3707_v58 = vsub.f32 %v1175_v16, %v1221_v10  ;;  %2600 = vmatpush1.bf16.msra.mxu0 %v3709_v0 }
 0x10c   : > { %2562 = vmatprep.subr.bf16.mxu1 %v3598_v18  ;;  %v1186_v18 = vld [vmem:[#allocation7 + $0x58] sm:$0xff] }
 0x10d   : > { %v1239_v40 = vand.u32 4294901760, %v1186_v18 }
 0x10f   : > { %2564 = vmatpush3.bf16.msra.mxu1 %v3600_v50  ;;  %v1183_v50 = vld [vmem:[#allocation7 + $0x40] sm:$0xff]  ;;  %v3732_v21 = vsub.f32 %v1186_v18, %v1239_v40 }
 0x110   : > { %2566 = vmatprep.subr.bf16.mxu1 %v4405_v14  ;;  %v1237_v41 = vand.u32 4294901760, %v1183_v50  ;;  %v3730_v14 = vpack.c.bf16 %v1239_v40, %v1235_v39 }
 0x112   : > { %1064 = vmatmul.mubr.f32.vlgmr.msra.gmra.mrb[8].mxu1 %v3355_v59  ;;  %4428 = vst [vmem:[#allocation30_spill] sm:$0xff] %v3730_v14 }
 0x113   : > { %2568 = vmatpush3.bf16.msra.mxu1 %v4407_v23  ;;  %1166 = vmatprep.mubr.f32.mxu1 %v4424_v52  ;;  %v3734_v23 = vsub.f32 %v1183_v50, %v1237_v41 }
 0x114   : > { %2570 = vmatprep.subr.bf16.mxu1 %v4409_v30  ;;  %v3736_v30 = vsub.f32 %v1185_v1, %v1241_v43  ;;  %v1261_v1 = vand.u32 4294901760, %v1195_v31 }
 0x116   : > { %4429 = vst [vmem:[#allocation34_spill] sm:$0xff] %v3736_v30 }
 0x117   : > { %2572 = vmatpush3.bf16.msra.mxu1 %v4410_v38  ;;  %v1247_v38 = vand.u32 4294901760, %v1190_v44 }
 0x118   : > { %2574 = vmatprep.subr.bf16.mxu1 %v4411_v45  ;;  %v3738_v45 = vsub.f32 %v1188_v22, %v1243_v54  ;;  %v1265_v22 = vand.u32 4294901760, %v1197_v53 }
 0x11b   : > { %2576 = vmatpush3.bf16.msra.mxu1 %v4412_v24  ;;  %v1245_v24 = vand.u32 4294901760, %v1187_v55 }
 0x11c   : > { %2578 = vmatprep.subr.bf16.mxu1 %v4413_v37  ;;  %v3741_v37 = vpack.c.bf16 %v1241_v43, %v1237_v41  ;;  %v3777_v41 = vpack.c.bf16 %v1265_v22, %v1261_v1  ;;  %v1200_v43 = vld [vmem:[#allocation7 + $0xc8] sm:$0xff] }
 0x11e   : > { %4430 = vst [vmem:[#allocation12_spill] sm:$0xff] %v3741_v37  ;;  %4442 = vst [vmem:[#allocation23_spill] sm:$0xff] %v3777_v41 }
 0x11f   : > { %2580 = vmatpush3.bf16.msra.mxu1 %v4414_v63  ;;  %v1249_v63 = vand.u32 4294901760, %v1189_v5 }
 0x120   : > { %2582 = vmatprep.subr.bf16.mxu1 %v4415_v27  ;;  %v1251_v27 = vand.u32 4294901760, %v1192_v13 }
 0x121   : > { %v3757_v6 = vpack.c.bf16 %v1249_v63, %v1245_v24 }
 0x123   : > { %2584 = vmatpush3.bf16.msra.mxu1 %v4416_v7  ;;  %v3744_v7 = vpack.c.bf16 %v1247_v38, %v1243_v54  ;;  %4436 = vst [vmem:[#allocation17_spill] sm:$0xff] %v3757_v6  ;;  %v3782_v54 = vsub.f32 %v3695_v57, %v1219_v34  ;;  %v1204_v34 = vld [vmem:[#allocation7 + $0xe8] sm:$0xff] }
 0x124   : > { %2586 = vmatprep.subr.bf16.mxu1 %v4417_v3  ;;  %v3746_v3 = vsub.f32 %v1190_v44, %v1247_v38  ;;  %v1202_v44 = vld [vmem:[#allocation7 + $0xd8] sm:$0xff] }
 0x125   : > { %4431 = vst [vmem:[#allocation32_spill] sm:$0xff] %v3744_v7 }
 0x126   : > { %4432 = vst [vmem:[#allocation13_spill] sm:$0xff] %v3746_v3 }
 0x127   : > { %2588 = vmatpush3.bf16.msra.mxu1 %v4418_v11  ;;  %v3748_v11 = vsub.f32 %v1187_v55, %v1245_v24  ;;  %v3787_v55 = vsub.f32 %v3697_v48, %v1223_v17  ;;  %v1275_v48 = vand.u32 4294901760, %v1204_v34 }
 0x128   : > { %2590 = vmatprep.subr.bf16.mxu1 %v4419_v20  ;;  %v1255_v20 = vand.u32 4294901760, %v1194_v29 }
 0x12a   : > { %v3760_v52 = vpack.c.bf16 %v1255_v20, %v1251_v27 }
 0x12b   : > { %2592 = vmatpush3.bf16.msra.mxu1 %v4420_v51  ;;  %v3750_v51 = vsub.f32 %v1189_v5, %v1249_v63  ;;  %v1267_v5 = vand.u32 4294901760, %v1200_v43 }
 0x12c   : > { %2594 = vmatprep.subr.bf16.mxu1 %v4421_v2  ;;  %v3752_v2 = vsub.f32 %v1192_v13, %v1251_v27  ;;  %4437 = vst [vmem:[#allocation18_spill] sm:$0xff] %v3760_v52  ;;  %v1271_v13 = vand.u32 4294901760, %v1202_v44 }
 0x12d   : > { %4433 = vst [vmem:[#allocation14_spill] sm:$0xff] %v3750_v51 }
 0x12e   : > { %4434 = vst [vmem:[#allocation15_spill] sm:$0xff] %v3752_v2  ;;  %v3793_v27 = vpack.c.bf16 %v1271_v13, %v1267_v5 }
 0x12f   : > { %2596 = vmatpush3.bf16.msra.mxu1 %v4422_v46  ;;  %v3754_v46 = vsub.f32 %v1194_v29, %v1255_v20  ;;  %v1201_v29 = vld [vmem:[#allocation7 + $0xd0] sm:$0xff]  ;;  %v1206_v20 = vld [vmem:[#allocation7 + $0xf8] sm:$0xff] }
 0x130   : > { %v1273_v63 = vand.u32 4294901760, %v1201_v29  ;;  %4443 = vst [vmem:[#allocation24_spill] sm:$0xff] %v3793_v27  ;;  %v1279_v17 = vand.u32 4294901760, %v1206_v20 }
 0x131   : > { %4435 = vst [vmem:[#allocation16_spill] sm:$0xff] %v3754_v46 }
 0x132   : > { %1168 = vmatmul.mubr.f32.vlgmr.msra.gmra.mrb[10].mxu1 %v3355_v59  ;;  %v1231_v59 = vand.u32 4294901760, %v1182_v12 }
 0x134   : > { %v3713_v35 = vpack.c.bf16 %v1231_v59, %v1227_v49  ;;  %v3718_v26 = vsub.f32 %v1182_v12, %v1231_v59  ;;  %v1198_v12 = vld [vmem:[#allocation7 + $0xb8] sm:$0xff]  ;;  %v1259_v49 = vand.u32 4294901760, %v1196_v8 }
 0x135   : > { %v1263_v59 = vand.u32 4294901760, %v1198_v12 }
 0x136   : > { %4426 = vst [vmem:[#allocation26_spill] sm:$0xff] %v3713_v35  ;;  %2602 = vmatprep.subr.bf16.mxu0 %v3713_v35 }
 0x137   : > { %2604 = vmatpush1.bf16.msra.mxu0 %v3722_v56  ;;  %v3774_v33 = vpack.c.bf16 %v1263_v59, %v1259_v49 }
 0x138   : > { %2606 = vmatprep.subr.bf16.mxu0 %v3730_v14 }
 0x139   : > { %4441 = vst [vmem:[#allocation22_spill] sm:$0xff] %v3774_v33 }
 0x13b   : > { %2608 = vmatpush1.bf16.msra.mxu0 %v3741_v37 }
 0x13c   : > { %2610 = vmatprep.subr.bf16.mxu0 %v3744_v7 }
 0x13f   : > { %2612 = vmatpush1.bf16.msra.mxu0 %v3757_v6 }
 0x140   : > { %2614 = vmatprep.subr.bf16.mxu0 %v3760_v52 }
 0x165   : > { %v2227_v19 = vpop.f32.mrb[0].mxu1 }
 0x166   : > { %v2228_v42 = vpop.f32.mrb[1].mxu1 }
 0x167   : > { %v3693_v25 = vadd.f32 %v2228_v42, %v2227_v19  ;;  %v1191_v19 = vld [vmem:[#allocation7 + $0x80] sm:$0xff]  ;;  %v1193_v42 = vld [vmem:[#allocation7 + $0x90] sm:$0xff] }
 0x168   : > { %v1253_v16 = vand.u32 4294901760, %v1191_v19  ;;  %v1257_v36 = vand.u32 4294901760, %v1193_v42 }
 0x169   : > { %v420_v39 = vadd.f32 %v3693_v25, %v2187_v60  ;;  %v1199_v25 = vld [vmem:[#allocation7 + $0xc0] sm:$0xff]  ;;  %v3802_v60 = vsub.f32 %v1198_v12, %v1263_v59  ;;  %v3821_v12 = vsub.f32 %v1206_v20, %v1279_v17 }
 0x16a   : > { %v3764_v10 = vpack.c.bf16 %v1257_v36, %v1253_v16  ;;  %v3770_v18 = vsub.f32 %v1191_v19, %v1253_v16  ;;  %v3772_v50 = vsub.f32 %v1193_v42, %v1257_v36  ;;  %v1269_v24 = vand.u32 4294901760, %v1199_v25  ;;  %v1203_v19 = vld [vmem:[#allocation7 + $0xe0] sm:$0xff] }
 0x16b   : > { %v3800_v36 = vsub.f32 %v1196_v8, %v1259_v49  ;;  %4446 = vst [vmem:[#allocation33_spill] sm:$0xff] %v3802_v60  ;;  %v3815_v42 = vsub.f32 %v1201_v29, %v1273_v63  ;;  %v3817_v16 = vpack.c.bf16 %v1279_v17, %v1275_v48  ;;  %v3819_v8 = vsub.f32 %v1204_v34, %v1275_v48 }
 0x16c   : > { %4438 = vst [vmem:[#allocation19_spill] sm:$0xff] %v3764_v10  ;;  %2616 = vmatpush1.bf16.msra.mxu0 %v3764_v10  ;;  %4439 = vst [vmem:[#allocation20_spill] sm:$0xff] %v3770_v18  ;;  %v3795_v57 = vpack.c.bf16 %v1273_v63, %v1269_v24  ;;  %v1277_v49 = vand.u32 4294901760, %v1203_v19 }
 0x16d   : > { %4440 = vst [vmem:[#allocation21_spill] sm:$0xff] %v3772_v50  ;;  %2618 = vmatprep.subr.bf16.mxu0 %v3774_v33  ;;  %4445 = vst [vmem:[#allocation31_spill] sm:$0xff] %v3800_v36  ;;  %v4298_v33 = vand.u32 4294901760, %v3802_v60 }
 0x16e   : > { %4444 = vst [vmem:[#allocation28_spill] sm:$0xff] %v3795_v57  ;;  %4450 = vst [vmem:[#allocation37_spill] sm:$0xff] %v3815_v42 }
 0x16f   : > { %4451 = vst [vmem:[#allocation38_spill] sm:$0xff] %v3817_v16  ;;  %4452 = vst [vmem:[#allocation39_spill] sm:$0xff] %v3819_v8 }
 0x170   : > { %2620 = vmatpush1.bf16.msra.mxu0 %v3777_v41  ;;  %v3813_v41 = vsub.f32 %v1199_v25, %v1269_v24  ;;  %4453 = vst [vmem:[#allocation40_spill] sm:$0xff] %v3821_v12  ;;  %v4261_v25 = vand.u32 4294901760, %v3715_v15 }
 0x171   : > { %2622 = vmatprep.subr.bf16.mxu0 %v3793_v27  ;;  %v3811_v27 = vsub.f32 %v1202_v44, %v1271_v13  ;;  %v4267_v44 = vmov 0.0   ;;  %v4262_v13 = vand.u32 4294901760, %v3711_v9 }
 0x172   : > { %4449 = vst [vmem:[#allocation36_spill] sm:$0xff] %v3813_v41  ;;  %1315 = vmatprep.mubr.f32.mxu0 %v4267_v44  ;;  %v1353_v17 = vsub.f32 %v3715_v15, %v4261_v25 }
 0x173   : > { %4448 = vst [vmem:[#allocation35_spill] sm:$0xff] %v3811_v27  ;;  %v1347_v48 = vsub.f32 %v3711_v9, %v4262_v13  ;;  %v4274_v13 = vand.u32 4294901760, %v3732_v21 }
 0x174   : > { %2624 = vmatpush1.bf16.msra.mxu0 %v3795_v57 }
 0x175   : > { %2626 = vmatprep.subr.bf16.mxu0 %v3817_v16 }
 0x185   : > { %v2262_v47 = vpop.f32.mrb[2].mxu1 }
 0x186   : > { %v2263_v32 = vpop.f32.mrb[3].mxu1 }
 0x187   : > { %v2264_v40 = vadd.f32 %v2263_v32, %v2262_v47  ;;  %v3804_v47 = vsub.f32 %v1195_v31, %v1261_v1  ;;  %v3806_v32 = vsub.f32 %v1197_v53, %v1265_v22  ;;  %v4454_v31 = vand.u32 4294901760, %v3782_v54 }
 0x188   : > { %v4455_v1 = vand.u32 4294901760, %v3787_v55 }
 0x189   : > { %v3790_v38 = vadd.f32 %v2264_v40, %v420_v39  ;;  %4447 = vst [vmem:[#allocation27_spill] sm:$0xff] %v3806_v32  ;;  %v1205_v39 = vld [vmem:[#allocation7 + $0xf0] sm:$0xff]  ;;  %v3809_v40 = vsub.f32 %v1200_v43, %v1267_v5  ;;  %v1329_v53 = vsub.f32 %v3782_v54, %v4454_v31  ;;  %v3830_v43 = vsub.f32 %v1203_v19, %v1277_v49 }
 0x18a   : > { %v1281_v59 = vand.u32 4294901760, %v1205_v39  ;;  %v1341_v22 = vsub.f32 %v3787_v55, %v4455_v1  ;;  %v4264_v5 = vand.u32 4294901760, %v3707_v58  ;;  %v4263_v19 = vand.u32 4294901760, %v3718_v26 }
 0x18b   : > { %v1330_v63 = vand.u32 4294901760, %v1329_v53  ;;  %v1348_v53 = vand.u32 4294901760, %v1347_v48  ;;  %v1354_v1 = vand.u32 4294901760, %v1353_v17  ;;  %v4275_v17 = vand.u32 4294901760, %v3734_v23 }
 0x18c   : > { %v3836_v29 = vpack.c.bf16 %v1281_v59, %v1277_v49  ;;  %v3838_v24 = vsub.f32 %v1205_v39, %v1281_v59  ;;  %v1342_v34 = vand.u32 4294901760, %v1341_v22  ;;  %v1335_v20 = vsub.f32 %v3707_v58, %v4264_v5 }
 0x18d   : > { %v4265_v49 = vand.u32 4294901760, %v3724_v61  ;;  %v4266_v59 = vand.u32 4294901760, %v3726_v62  ;;  %v1365_v22 = vsub.f32 %v3718_v26, %v4263_v19  ;;  %v4276_v19 = vand.u32 4294901760, %v3736_v30 }
 0x18e   : > { %4456 = vst [vmem:[#allocation41_spill] sm:$0xff] %v3836_v29  ;;  %4457 = vst [vmem:[#allocation42_spill] sm:$0xff] %v3838_v24  ;;  %2628 = vmatpush1.bf16.msra.mxu0 %v3836_v29  ;;  %v2629_v39 = vpack.c.bf16 %v1342_v34, %v1330_v63  ;;  %v1336_v31 = vand.u32 4294901760, %v1335_v20  ;;  %v4269_v34 = vand.u32 4294901760, %v3728_v4  ;;  %v4277_v29 = vand.u32 4294901760, %v3746_v3 }
 0x18f   : > { %v1359_v25 = vsub.f32 %v3724_v61, %v4265_v49  ;;  %v1371_v63 = vsub.f32 %v3726_v62, %v4266_v59  ;;  %v1366_v48 = vand.u32 4294901760, %v1365_v22  ;;  %v1389_v59 = vsub.f32 %v3732_v21, %v4274_v13 }
 0x190   : > { %2630 = vmatprep.subr.bf16.mxu0 %v2629_v39  ;;  %v3864_v20 = vpack.c.bf16 %v1348_v53, %v1336_v31  ;;  %v1377_v49 = vsub.f32 %v3728_v4, %v4269_v34  ;;  %v1383_v31 = vsub.f32 %v3734_v23, %v4275_v17  ;;  %v1395_v53 = vsub.f32 %v3736_v30, %v4276_v19 }
 0x191   : > { %v1360_v39 = vand.u32 4294901760, %v1359_v25  ;;  %v1372_v5 = vand.u32 4294901760, %v1371_v63  ;;  %v3874_v44 = vpack.c.bf16 %v1366_v48, %v1354_v1  ;;  %v4278_v25 = vand.u32 4294901760, %v3738_v45 }
 0x192   : > { %v1378_v63 = vand.u32 4294901760, %v1377_v49  ;;  %v1390_v34 = vand.u32 4294901760, %v1389_v59  ;;  %v1384_v16 = vand.u32 4294901760, %v1383_v31  ;;  %v1396_v13 = vand.u32 4294901760, %v1395_v53 }
 0x193   : > { %v3883_v22 = vpack.c.bf16 %v1372_v5, %v1360_v39  ;;  %v1401_v1 = vsub.f32 %v3738_v45, %v4278_v25  ;;  %v4279_v48 = vand.u32 4294901760, %v3748_v11  ;;  %v1413_v19 = vsub.f32 %v3746_v3, %v4277_v29 }
 0x194   : > { %v3890_v17 = vpack.c.bf16 %v1390_v34, %v1378_v63  ;;  %v4280_v5 = vand.u32 4294901760, %v3750_v51  ;;  %v3896_v49 = vpack.c.bf16 %v1396_v13, %v1384_v16  ;;  %v4283_v31 = vand.u32 4294901760, %v3752_v2 }
 0x195   : > { %v1402_v59 = vand.u32 4294901760, %v1401_v1  ;;  %v1407_v39 = vsub.f32 %v3748_v11, %v4279_v48  ;;  %v1414_v53 = vand.u32 4294901760, %v1413_v19  ;;  %v4288_v63 = vand.u32 4294901760, %v3754_v46 }
 0x196   : > { %v1419_v34 = vsub.f32 %v3750_v51, %v4280_v5  ;;  %v4289_v29 = vand.u32 4294901760, %v3770_v18  ;;  %v1425_v16 = vsub.f32 %v3752_v2, %v4283_v31  ;;  %v4290_v13 = vand.u32 4294901760, %v3772_v50 }
 0x197   : > { %v1408_v25 = vand.u32 4294901760, %v1407_v39  ;;  %v3911_v1 = vpack.c.bf16 %v1414_v53, %v1402_v59  ;;  %v1437_v19 = vsub.f32 %v3754_v46, %v4288_v63  ;;  %v4293_v31 = vand.u32 4294901760, %v3800_v36 }
 0x198   : > { %v1420_v48 = vand.u32 4294901760, %v1419_v34  ;;  %v1431_v5 = vsub.f32 %v3770_v18, %v4289_v29  ;;  %v1426_v57 = vand.u32 4294901760, %v1425_v16  ;;  %v1443_v39 = vsub.f32 %v3772_v50, %v4290_v13 }
 0x199   : > { %v1438_v53 = vand.u32 4294901760, %v1437_v19  ;;  %v4303_v10 = vand.u32 4294901760, %v3804_v47  ;;  %v1449_v29 = vsub.f32 %v3800_v36, %v4293_v31  ;;  %v1461_v16 = vsub.f32 %v3802_v60, %v4298_v33 }
 0x19a   : > { %v3924_v59 = vpack.c.bf16 %v1420_v48, %v1408_v25  ;;  %v1432_v34 = vand.u32 4294901760, %v1431_v5  ;;  %v1444_v63 = vand.u32 4294901760, %v1443_v39  ;;  %v4305_v13 = vand.u32 4294901760, %v3806_v32 }
 0x19b   : > { %v3934_v52 = vpack.c.bf16 %v1438_v53, %v1426_v57  ;;  %v1455_v25 = vsub.f32 %v3804_v47, %v4303_v10  ;;  %v1450_v19 = vand.u32 4294901760, %v1449_v29  ;;  %v1462_v39 = vand.u32 4294901760, %v1461_v16 }
 0x19c   : > { %v3939_v5 = vpack.c.bf16 %v1444_v63, %v1432_v34  ;;  %v1467_v31 = vsub.f32 %v3806_v32, %v4305_v13  ;;  %v4304_v33 = vand.u32 4294901760, %v3809_v40  ;;  %v4306_v57 = vand.u32 4294901760, %v3811_v27 }
 0x19d   : > { %v1456_v7 = vand.u32 4294901760, %v1455_v25  ;;  %v4307_v53 = vand.u32 4294901760, %v3813_v41  ;;  %v3947_v14 = vpack.c.bf16 %v1462_v39, %v1450_v19  ;;  %v4308_v63 = vand.u32 4294901760, %v3815_v42 }
 0x19e   : > { %v1468_v10 = vand.u32 4294901760, %v1467_v31  ;;  %v1473_v29 = vsub.f32 %v3809_v40, %v4304_v33  ;;  %v1485_v34 = vsub.f32 %v3811_v27, %v4306_v57  ;;  %v4318_v13 = vand.u32 4294901760, %v3821_v12 }
 0x19f   : > { %v1479_v16 = vsub.f32 %v3813_v41, %v4307_v53  ;;  %v1491_v31 = vsub.f32 %v3815_v42, %v4308_v63 }
 0x1a0   : > { %v1474_v19 = vand.u32 4294901760, %v1473_v29  ;;  %v1486_v39 = vand.u32 4294901760, %v1485_v34 }
 0x1a1   : > { %v1480_v33 = vand.u32 4294901760, %v1479_v16  ;;  %v1492_v57 = vand.u32 4294901760, %v1491_v31 }
 0x1a3   : > { %v2655_v63 = vpack.c.bf16 %v1492_v57, %v1480_v33  ;;  %v2663_v33 = vpack.c.bf16 %v3711_v9, %v3707_v58  ;;  %v2665_v57 = vpack.c.bf16 %v3718_v26, %v3715_v15 }
 0x1a5   : > { %v2297_v48 = vpop.f32.mrb[4].mxu1 }
 0x1a6   : > { %v2298_v6 = vpop.f32.mrb[5].mxu1 }
 0x1a7   : > { %v2299_v37 = vadd.f32 %v2298_v6, %v2297_v48  ;;  %v3960_v6 = vpack.c.bf16 %v1468_v10, %v1456_v7  ;;  %v4309_v48 = vand.u32 4294901760, %v3819_v8  ;;  %v4316_v7 = vand.u32 4294901760, %v3838_v24 }
 0x1a8   : > { %v2653_v10 = vpack.c.bf16 %v1486_v39, %v1474_v19  ;;  %v2661_v19 = vpack.c.bf16 %v3787_v55, %v3782_v54  ;;  %v2669_v39 = vpack.c.bf16 %v3732_v21, %v3728_v4 }
 0x1a9   : > { %v790_v25 = vadd.f32 %v2299_v37, %v3790_v38  ;;  %v1497_v53 = vsub.f32 %v3819_v8, %v4309_v48  ;;  %v4317_v37 = vand.u32 4294901760, %v3830_v43  ;;  %v1509_v38 = vsub.f32 %v3821_v12, %v4318_v13 }
 0x1aa   : > { %v1515_v16 = vsub.f32 %v3838_v24, %v4316_v7  ;;  %v2681_v7 = vpack.c.bf16 %v3802_v60, %v3800_v36  ;;  %v2683_v13 = vpack.c.bf16 %v3806_v32, %v3804_v47 }
 0x1ab   : > { %v1498_v29 = vand.u32 4294901760, %v1497_v53  ;;  %v1503_v34 = vsub.f32 %v3830_v43, %v4317_v37  ;;  %v1510_v31 = vand.u32 4294901760, %v1509_v38  ;;  %v2667_v53 = vpack.c.bf16 %v3726_v62, %v3724_v61 }
 0x1ac   : > { %v1516_v56 = vand.u32 4294901760, %v1515_v16  ;;  %v2671_v38 = vpack.c.bf16 %v3736_v30, %v3734_v23 }
 0x1ad   : > { %v1504_v48 = vand.u32 4294901760, %v1503_v34  ;;  %v2657_v35 = vpack.c.bf16 %v1510_v31, %v1498_v29  ;;  %v2677_v29 = vpack.c.bf16 %v3754_v46, %v3752_v2  ;;  %v2679_v34 = vpack.c.bf16 %v3772_v50, %v3770_v18 }
 0x1ae   : > { %v2689_v46 = vpack.c.bf16 %v3821_v12, %v3819_v8  ;;  %v2691_v50 = vpack.c.bf16 %v3838_v24, %v3830_v43  ;;  %v4458_v24 = vmov 0.0  }
 0x1af   : > { %v2659_v0 = vpack.c.bf16 %v1516_v56, %v1504_v48  ;;  %v2673_v56 = vpack.c.bf16 %v3746_v3, %v3738_v45  ;;  %v2675_v48 = vpack.c.bf16 %v3750_v51, %v3748_v11  ;;  %v2685_v3 = vpack.c.bf16 %v3811_v27, %v3809_v40 }
 0x1b0   : > { %v2687_v51 = vpack.c.bf16 %v3815_v42, %v3813_v41 }
 0x1c5   : > { %v2332_v16 = vpop.f32.mrb[6].mxu1 }
 0x1c6   : > { %v2333_v31 = vpop.f32.mrb[7].mxu1 }
 0x1c7   : > { %v2334_v37 = vadd.f32 %v2333_v31, %v2332_v16 }
 0x1c9   : > { %v898_v30 = vadd.f32 %v2334_v37, %v790_v25  ;;  %v3040_v37 = vmov -1.0  }
 0x1e5   : > { %v2367_v18 = vpop.f32.mrb[8].mxu1 }
 0x1e6   : > { %v2368_v2 = vpop.f32.mrb[9].mxu1 }
 0x1e7   : > { %v2369_v60 = vadd.f32 %v2368_v2, %v2367_v18  ;;  %v4463_v2 = vld [vmem:[#allocation12_spill] sm:$0xff]  ;;  %v4468_v18 = vld [vmem:[#allocation22_spill] sm:$0xff] }
 0x1e9   : > { %v1066_v16 = vadd.f32 %v2369_v60, %v898_v30  ;;  %v4462_v30 = vld [vmem:[#allocation30_spill] sm:$0xff] }
 0x1ea   : > { %v4472_v60 = vld [vmem:[#allocation38_spill] sm:$0xff] }
 0x205   : > { %v2402_v31 = vpop.f32.mrb[10].mxu1 }
 0x206   : > { %v2403_v36 = vpop.f32.mrb[11].mxu1 }
 0x207   : > { %v2404_v32 = vadd.f32 %v2403_v36, %v2402_v31  ;;  %v4471_v36 = vld [vmem:[#allocation28_spill] sm:$0xff]  ;;  %v4503_v31 = vld [vmem:[#allocation33_spill] sm:$0xff] }
 0x209   : > { %v1170_v25 = vadd.f32 %v2404_v32, %v1066_v16  ;;  %v4473_v32 = vand.u32 4294901760, %v3782_v54  ;;  %v4480_v54 = vand.u32 4294901760, %v3724_v61  ;;  %v4487_v61 = vand.u32 4294901760, %v3738_v45 }
 0x20b   : > { %vm1173_vm0 = vcmp.ge.f32.partialorder %v1170_v25, 0.0 }
 0x20c   : > { %v4013_v27 = vsel %vm1173_vm0, 1.0, %v3040_v37  ;;  %v4505_v37 = vand.u32 4294901760, %v3804_v47 }
 0x20d   : > { %v1316_v42 = vsub.f32 %v4013_v27, %v4013_v27 }
 0x20f   : > { %v1317_v41 = vand.u32 4294901760, %v1316_v42 }
 0x211   : > { %v1318_v12 = vsub.f32 %v1316_v42, %v1317_v41 }
 0x213   : > { %v1319_v8 = vand.u32 4294901760, %v1318_v12 }
 0x215   : > { %1320 = vmatmul.mubr.f32.vlgmr.msra.gmra.mrb[0].mxu0 %v1319_v8  ;;  %v4474_v8 = vand.u32 4294901760, %v3787_v55  ;;  %v4481_v55 = vand.u32 4294901760, %v3726_v62 }
 0x216   : > { %2632 = vmatpush1.bf16.msra.mxu0 %v3864_v20  ;;  %1550 = vmatprep.mubr.f32.mxu0 %v4458_v24  ;;  %v4476_v20 = vand.u32 4294901760, %v3707_v58  ;;  %v4482_v58 = vand.u32 4294901760, %v3728_v4 }
 0x217   : > { %2634 = vmatprep.subr.bf16.mxu0 %v3874_v44  ;;  %v2725_v12 = vpack.c.bf16 %v4474_v8, %v4473_v32  ;;  %v4475_v44 = vld [vmem:[#allocation41_spill] sm:$0xff]  ;;  %v4506_v32 = vld [vmem:[#allocation27_spill] sm:$0xff] }
 0x218   : > { %v4507_v8 = vand.u32 4294901760, %v4506_v32 }
 0x21a   : > { %2636 = vmatpush1.bf16.msra.mxu0 %v3883_v22 }
 0x21b   : > { %2638 = vmatprep.subr.bf16.mxu0 %v3890_v17  ;;  %v4477_v17 = vand.u32 4294901760, %v3711_v9  ;;  %v4483_v9 = vand.u32 4294901760, %v3732_v21  ;;  %v4493_v21 = vld [vmem:[#allocation15_spill] sm:$0xff] }
 0x21d   : > { %v2727_v22 = vpack.c.bf16 %v4477_v17, %v4476_v20  ;;  %v4508_v20 = vand.u32 4294901760, %v3809_v40  ;;  %v4509_v17 = vld [vmem:[#allocation35_spill] sm:$0xff] }
 0x21e   : > { %2640 = vmatpush1.bf16.msra.mxu0 %v3896_v49  ;;  %v4478_v49 = vand.u32 4294901760, %v3715_v15  ;;  %v4484_v15 = vand.u32 4294901760, %v3734_v23 }
 0x21f   : > { %2642 = vmatprep.subr.bf16.mxu0 %v3911_v1 }
 0x222   : > { %2644 = vmatpush1.bf16.msra.mxu0 %v3924_v59  ;;  %v2731_v59 = vpack.c.bf16 %v4481_v55, %v4480_v54  ;;  %v4513_v54 = vld [vmem:[#allocation37_spill] sm:$0xff] }
 0x223   : > { %2646 = vmatprep.subr.bf16.mxu0 %v3934_v52  ;;  %v4464_v52 = vld [vmem:[#allocation32_spill] sm:$0xff]  ;;  %v4514_v55 = vand.u32 4294901760, %v4513_v54 }
 0x226   : > { %2648 = vmatpush1.bf16.msra.mxu0 %v3939_v5  ;;  %v2733_v5 = vpack.c.bf16 %v4483_v9, %v4482_v58  ;;  %v4515_v58 = vld [vmem:[#allocation39_spill] sm:$0xff] }
 0x227   : > { %2650 = vmatprep.subr.bf16.mxu0 %v3947_v14  ;;  %v4461_v14 = vld [vmem:[#allocation29_spill] sm:$0xff]  ;;  %v4516_v9 = vand.u32 4294901760, %v4515_v58 }
 0x22a   : > { %2652 = vmatpush1.bf16.msra.mxu0 %v3960_v6  ;;  %v4488_v6 = vld [vmem:[#allocation13_spill] sm:$0xff] }
 0x22b   : > { %2654 = vmatprep.subr.bf16.mxu0 %v2653_v10  ;;  %v4489_v62 = vand.u32 4294901760, %v4488_v6  ;;  %v4490_v10 = vand.u32 4294901760, %v3748_v11  ;;  %v4504_v11 = vand.u32 4294901760, %v4503_v31 }
 0x22e   : > { %2656 = vmatpush1.bf16.msra.mxu0 %v2655_v63 }
 0x22f   : > { %2658 = vmatprep.subr.bf16.mxu0 %v2657_v35  ;;  %v4460_v35 = vld [vmem:[#allocation26_spill] sm:$0xff] }
 0x232   : > { %2660 = vmatpush1.bf16.msra.mxu0 %v2659_v0  ;;  %v4459_v0 = vld [vmem:[#allocation25_spill] sm:$0xff] }
 0x233   : > { %2662 = vmatprep.subr.bf16.mxu0 %v2661_v19  ;;  %v4491_v19 = vld [vmem:[#allocation14_spill] sm:$0xff] }
 0x234   : > { %v4492_v4 = vand.u32 4294901760, %v4491_v19 }
 0x235   : > { %1551 = vmatmul.mubr.f32.vlgmr.msra.gmra.mrb[0].mxu0 %v4013_v27 }
 0x236   : > { %2664 = vmatpush1.bf16.msra.mxu0 %v2663_v33  ;;  %1685 = vmatprep.mubr.f32.mxu0 %v4458_v24  ;;  %v2739_v33 = vpack.c.bf16 %v4492_v4, %v4490_v10 }
 0x237   : > { %2666 = vmatprep.subr.bf16.mxu0 %v2665_v57  ;;  %v4494_v57 = vand.u32 4294901760, %v4493_v21 }
 0x23a   : > { %2668 = vmatpush1.bf16.msra.mxu0 %v2667_v53  ;;  %v4495_v53 = vld [vmem:[#allocation16_spill] sm:$0xff] }
 0x23b   : > { %2670 = vmatprep.subr.bf16.mxu0 %v2669_v39  ;;  %v4496_v23 = vand.u32 4294901760, %v4495_v53 }
 0x23d   : > { %v2741_v39 = vpack.c.bf16 %v4496_v23, %v4494_v57 }
 0x23e   : > { %2672 = vmatpush1.bf16.msra.mxu0 %v2671_v38  ;;  %v4497_v38 = vld [vmem:[#allocation20_spill] sm:$0xff] }
 0x23f   : > { %2674 = vmatprep.subr.bf16.mxu0 %v2673_v56  ;;  %v4498_v56 = vand.u32 4294901760, %v4497_v38 }
 0x242   : > { %2676 = vmatpush1.bf16.msra.mxu0 %v2675_v48  ;;  %v4499_v48 = vld [vmem:[#allocation21_spill] sm:$0xff] }
 0x243   : > { %2678 = vmatprep.subr.bf16.mxu0 %v2677_v29  ;;  %v4500_v45 = vand.u32 4294901760, %v4499_v48 }
 0x245   : > { %v2743_v29 = vpack.c.bf16 %v4500_v45, %v4498_v56 }
 0x246   : > { %2680 = vmatpush1.bf16.msra.mxu0 %v2679_v34  ;;  %v4501_v34 = vld [vmem:[#allocation31_spill] sm:$0xff] }
 0x247   : > { %2682 = vmatprep.subr.bf16.mxu0 %v2681_v7  ;;  %v2737_v7 = vpack.c.bf16 %v4489_v62, %v4487_v61  ;;  %v4502_v16 = vand.u32 4294901760, %v4501_v34 }
 0x249   : > { %v2745_v25 = vpack.c.bf16 %v4504_v11, %v4502_v16 }
 0x24a   : > { %2684 = vmatpush1.bf16.msra.mxu0 %v2683_v13  ;;  %v4479_v13 = vand.u32 4294901760, %v3718_v26  ;;  %v4485_v26 = vld [vmem:[#allocation34_spill] sm:$0xff] }
 0x24b   : > { %2686 = vmatprep.subr.bf16.mxu0 %v2685_v3  ;;  %v4465_v3 = vld [vmem:[#allocation17_spill] sm:$0xff]  ;;  %v4486_v63 = vand.u32 4294901760, %v4485_v26  ;;  %v4519_v26 = vand.u32 4294901760, %v3830_v43 }
 0x24c   : > { %v2729_v1 = vpack.c.bf16 %v4479_v13, %v4478_v49  ;;  %v4511_v13 = vld [vmem:[#allocation36_spill] sm:$0xff] }
 0x24e   : > { %2688 = vmatpush1.bf16.msra.mxu0 %v2687_v51  ;;  %v4466_v51 = vld [vmem:[#allocation18_spill] sm:$0xff] }
 0x24f   : > { %2690 = vmatprep.subr.bf16.mxu0 %v2689_v46  ;;  %v4467_v46 = vld [vmem:[#allocation19_spill] sm:$0xff] }
 0x252   : > { %2692 = vmatpush1.bf16.msra.mxu0 %v2691_v50  ;;  %v4469_v50 = vld [vmem:[#allocation23_spill] sm:$0xff] }
 0x253   : > { %2694 = vmatprep.subr.bf16.mxu0 %v3705_v28 }
 0x255   : > { %1687 = vmatmul.mubr.f32.vlgmr.msra.gmra.mrb[0].mxu0 %v1316_v42  ;;  %v4470_v42 = vld [vmem:[#allocation24_spill] sm:$0xff] }
 0x256   : > { %2696 = vmatpush1.bf16.msra.mxu0 %v4459_v0  ;;  %1789 = vmatprep.mubr.f32.mxu0 %v4458_v24 }
 0x257   : > { %2698 = vmatprep.subr.bf16.mxu0 %v4460_v35 }
 0x25a   : > { %2700 = vmatpush1.bf16.msra.mxu0 %v4461_v14 }
 0x25b   : > { %2702 = vmatprep.subr.bf16.mxu0 %v4462_v30 }
 0x25e   : > { %2704 = vmatpush1.bf16.msra.mxu0 %v4463_v2 }
 0x25f   : > { %2706 = vmatprep.subr.bf16.mxu0 %v4464_v52 }
 0x262   : > { %2708 = vmatpush1.bf16.msra.mxu0 %v4465_v3 }
 0x263   : > { %2710 = vmatprep.subr.bf16.mxu0 %v4466_v51 }
 0x266   : > { %2712 = vmatpush1.bf16.msra.mxu0 %v4467_v46 }
 0x267   : > { %2714 = vmatprep.subr.bf16.mxu0 %v4468_v18 }
 0x26a   : > { %2716 = vmatpush1.bf16.msra.mxu0 %v4469_v50 }
 0x26b   : > { %2718 = vmatprep.subr.bf16.mxu0 %v4470_v42 }
 0x26e   : > { %2720 = vmatpush1.bf16.msra.mxu0 %v4471_v36 }
 0x26f   : > { %2722 = vmatprep.subr.bf16.mxu0 %v4472_v60 }
 0x272   : > { %2724 = vmatpush1.bf16.msra.mxu0 %v4475_v44 }
 0x273   : > { %2726 = vmatprep.subr.bf16.mxu0 %v2725_v12  ;;  %v2747_v12 = vpack.c.bf16 %v4507_v8, %v4505_v37 }
 0x275   : > { %1792 = vmatmul.mubr.f32.vlgmr.msra.gmra.mrb[0].mxu0 %v1317_v41  ;;  %v2735_v41 = vpack.c.bf16 %v4486_v63, %v4484_v15  ;;  %v4520_v63 = vld [vmem:[#allocation42_spill] sm:$0xff] }
 0x276   : > { %2728 = vmatpush1.bf16.msra.mxu0 %v2727_v22  ;;  %1958 = vmatprep.mubr.f32.mxu0 %v4458_v24  ;;  %v4510_v22 = vand.u32 4294901760, %v4509_v17  ;;  %v4521_v40 = vand.u32 4294901760, %v4520_v63 }
 0x277   : > { %2730 = vmatprep.subr.bf16.mxu0 %v2729_v1  ;;  %v4512_v1 = vand.u32 4294901760, %v4511_v13 }
 0x278   : > { %v2749_v49 = vpack.c.bf16 %v4510_v22, %v4508_v20 }
 0x27a   : > { %2732 = vmatpush1.bf16.msra.mxu0 %v2731_v59  ;;  %v2751_v59 = vpack.c.bf16 %v4514_v55, %v4512_v1 }
 0x27b   : > { %2734 = vmatprep.subr.bf16.mxu0 %v2733_v5  ;;  %v4517_v5 = vld [vmem:[#allocation40_spill] sm:$0xff] }
 0x27c   : > { %v4518_v47 = vand.u32 4294901760, %v4517_v5 }
 0x27e   : > { %2736 = vmatpush1.bf16.msra.mxu0 %v2735_v41  ;;  %v2753_v15 = vpack.c.bf16 %v4518_v47, %v4516_v9  ;;  %v2755_v41 = vpack.c.bf16 %v4521_v40, %v4519_v26 }
 0x27f   : > { %2738 = vmatprep.subr.bf16.mxu0 %v2737_v7 }
 0x282   : > { %2740 = vmatpush1.bf16.msra.mxu0 %v2739_v33 }
 0x283   : > { %2742 = vmatprep.subr.bf16.mxu0 %v2741_v39 }
 0x286   : > { %2744 = vmatpush1.bf16.msra.mxu0 %v2743_v29 }
 0x287   : > { %2746 = vmatprep.subr.bf16.mxu0 %v2745_v25 }
 0x28a   : > { %2748 = vmatpush1.bf16.msra.mxu0 %v2747_v12 }
 0x28b   : > { %2750 = vmatprep.subr.bf16.mxu0 %v2749_v49 }
 0x28e   : > { %2752 = vmatpush1.bf16.msra.mxu0 %v2751_v59 }
 0x28f   : > { %2754 = vmatprep.subr.bf16.mxu0 %v2753_v15 }
 0x292   : > { %2756 = vmatpush1.bf16.msra.mxu0 %v2755_v41 }
 0x293   : > { %2758 = vmatprep.subr.bf16.mxu0 %v3705_v28  ;;  %v1209_v28 = vlaneseq }
 0x295   : > { %1959 = vmatmul.mubr.f32.vlgmr.msra.gmra.mrb[0].mxu0 %v4013_v27  ;;  %v1210_v43 = vshrl.u32 %v1209_v28, 7 }
 0x296   : > { %2760 = vmatpush1.bf16.msra.mxu0 %v4459_v0  ;;  %2061 = vmatprep.mubr.f32.mxu0 %v4458_v24  ;;  %v1207_v0 = vld [vmem:[%s4189_s4] sm:$0x3] }
 0x297   : > { %2762 = vmatprep.subr.bf16.mxu0 %v4460_v35  ;;  %v1211_v24 = vsub.s32 0, %v1210_v43  ;;  %v1215_v35 = vsub.s32 1, %v1210_v43 }
 0x29a   : > { %2764 = vmatpush1.bf16.msra.mxu0 %v4461_v14  ;;  %v1212_v14 = vrot.slane %v1207_v0, %v1211_v24 }
 0x29b   : > { %2766 = vmatprep.subr.bf16.mxu0 %v4462_v30  ;;  %v1216_v30 = vrot.slane %v1207_v0, %v1215_v35 }
 0x29e   : > { %2768 = vmatpush1.bf16.msra.mxu0 %v4463_v2 }
 0x29f   : > { %2770 = vmatprep.subr.bf16.mxu0 %v4464_v52 }
 0x2a2   : > { %2772 = vmatpush1.bf16.msra.mxu0 %v4465_v3 }
 0x2a3   : > { %2774 = vmatprep.subr.bf16.mxu0 %v4466_v51 }
 0x2a6   : > { %2776 = vmatpush1.bf16.msra.mxu0 %v4467_v46 }
 0x2a7   : > { %2778 = vmatprep.subr.bf16.mxu0 %v4468_v18 }
 0x2aa   : > { %2780 = vmatpush1.bf16.msra.mxu0 %v4469_v50 }
 0x2ab   : > { %2782 = vmatprep.subr.bf16.mxu0 %v4470_v42 }
 0x2ae   : > { %2784 = vmatpush1.bf16.msra.mxu0 %v4471_v36 }
 0x2af   : > { %2786 = vmatprep.subr.bf16.mxu0 %v4472_v60 }
 0x2b2   : > { %2788 = vmatpush1.bf16.msra.mxu0 %v4475_v44 }
 0x2b5   : > { %2062 = vmatmul.mubr.f32.vlgmr.msra.gmra.mrb[0].mxu0 %v4013_v27 }
 0x388   : > { %v2063_v2 = vpop.f32.mrb[0].mxu0 }
 0x389   : > { %v2789_v52 = vadd.f32 %v2063_v2, %v1212_v14  ;;  %v2065_v3 = vpop.f32.mrb[1].mxu0 }
 0x38a   : > { %v2790_v27 = vadd.f32 %v2065_v3, %v1216_v30 }
 0x38b   : > { %2068 = vst [vmem:[%s269_s13] sm:$0xff] %v2789_v52 }
 0x38c   : > { %2069 = vst [vmem:[%s269_s13 + $0x8] sm:$0xff] %v2790_v27 }
 0x38d   : > { %2973 = shalt.err (!%p2970_p2)
}
 0x38e   : > { %s2974_s14 = scalar_lea.hbm %s4141_s8, 256  ;;  %s2978_s26 = scalar_lea.hbm %s4190_s5, 512 }
 0x38f   : > { %p2975_p13 = scmp.ne.s32.totalorder %s4141_s8, %s2974_s14  ;;  %p2979_p4 = scmp.lt.u32.totalorder %s4141_s8, %s4190_s5 }
 0x390   : > { %p2980_p7 = scmp.lt.u32.totalorder %s2978_s26, %s2974_s14  ;;  %p2982_p11 = scmp.lt.u32.totalorder %s2974_s14, %s4141_s8 }
 0x391   : > { %p2976_p6 = pnand %p2975_p13, %p4522_p0 }
 0x392   : > { %p2981_p8 = por %p2980_p7, %p2979_p4 }
 0x393   : > { %p2977_p10 = pneg %p2976_p6 }
 0x394   : > { %p2983_p1 = por %p2982_p11, %p2981_p8 }
 0x396   : > { %p2984_p3 = pnand %p2983_p1, %p2977_p10 }
 0x398   : > { %2987 = shalt.err (!%p2984_p3)
}
 0x399   : > { %2811 = dma.vmem_to_hbm [thread:$0]  (%p4522_p0), %s4143_s7, 256, %s4141_s8, %s2071_s22  }
 0x39a PF: > { %s2097_s12 = sand.u32 1, %s3018_s18   ;;  %p4523_p5 = scmp.ne.s32.totalorder %s4336_s25, 0 }
 0x39b   : > { %p4524_p9 = scmp.ge.s32.totalorder %s3030_s21, 2  ;;  %s2098_s13 = scalar_lea.sflag [#allocation4], %s2097_s12 }
 0x39d   : > { %p2825_p12 = pnand %p4524_p9, %p4523_p5 }
 0x39f   : > { %3013 = dma.done.wait (!%p2825_p12), %s2098_s13, 256  }
 0x3a0   : > { %3015 = vsyncadd (!%p2825_p12), %s2098_s13, 4294967040  ;;  %p19_p2 = scmp.ge.s32.totalorder %s3182_s16, 4   ;;  %s4525_s18 = smov %s3022_s19 }
 0x3a1   : > { %s4526_s19 = smov %s3026_s20  ;;  %s4527_s20 = smov %s3191_s27 }
 0x3a2   : > { %s4528_s21 = smov %s3182_s16  ;;  %21 = sbr.rel (!%p19_p2) target bundleno = 6 (0x6), region = 93 }
 0x3a9   :  { %2103 = vsyncpa [#allocation3], 1 }
 0x3aa   :  { %2105 = vsyncpa [#allocation3 + $0x1], 1 }
 0x3ab   :  { %2106 = vsyncpa [#allocation6], 1 }
 0x3ac   :  { %2107 = vsyncpa [#allocation4], 1 }
 0x3ad   :  { %2109 = vsyncpa [#allocation4 + $0x1], 1 }

</bundles_post_ra>
